<compile_context>
chip_gen: v7x
topology: tpu7x:2x2x1
jax: 0.10.0
libtpu: 0.0.40
codegen_flags: <defaults>
</compile_context>

<pallas_src>
import functools

import numpy as np

import jax
import jax.numpy as jnp
from jax.experimental import pallas as pl
from jax.experimental.pallas import tpu as pltpu


def _round_up(x, m):
    return ((x + m - 1) // m) * m


# -----------------------------------------------------------------------------
# One-time (init-time) constant construction -- pure NumPy, zero per-call XLA.
# -----------------------------------------------------------------------------
def _band_np(w_hwio, W, kin_pad, kout_pad):
    """(3,3,Ci,Co) -> (3, kin_pad, kout_pad) block-Toeplitz bands, channel-major.

    band[dy][c*W + x_in, o*W + x_out] = w[dy, x_in - x_out + 1, c, o]
    so a 3x3 'same' conv over a channel-major slab (rows = y, cols = c*W + x) is
        out[y] = sum_dy slab[y - 1 + dy, :] @ band[dy].
    Zero padding in x is encoded by the omitted out-of-range taps; rows >= W*Ci
    are lane-alignment padding and stay zero.
    """
    kh, kw, Ci, Co = w_hwio.shape
    band = np.zeros((kh, kin_pad, kout_pad), np.float32)
    ocols = np.arange(Co) * W
    for dy in range(kh):
        for dx in range(kw):
            for xo in range(W):
                xi = xo + dx - 1
                if 0 <= xi < W:
                    for c in range(Ci):
                        band[dy, c * W + xi, ocols + xo] = w_hwio[dy, dx, c, :]
    return band


def prepare_basenet(params, batch, H, W, poolkernel=7, batch_block=None):
    """Build all kernel constants ONCE (host-side NumPy).

    batch_block: batch elements per grid step.  Default = whole batch (best on
    v5e/v6e: one pipeline step, max MXU fill).  On v7x with larger N, set it to
    N//2 so each TensorCore runs exactly one large fused step.
    """
    w1 = np.asarray(params["w1"], np.float32)      # (3,3,Cin,Cmid) HWIO
    b1 = np.asarray(params["b1"], np.float32)
    w2 = np.asarray(params["w2"], np.float32)      # (3,3,Cmid,Cout)
    b2 = np.asarray(params["b2"], np.float32)
    Cin, Cmid, Cout = w1.shape[2], w1.shape[3], w2.shape[3]
    K = poolkernel

    NB = batch if batch_block is None else batch_block
    assert batch % NB == 0, "batch must be divisible by batch_block"
    Hb = H + 2                       # rows per batch element (image + 2 halos)
    R = NB * Hb                      # slab rows per grid step
    Ho, Wo = (H - K) // K + 1, (W - K) // K + 1

    K1 = _round_up(W * Cin, 128)     # conv1 slab width  (lane aligned)
    K2 = _round_up(W * Cmid, 128)    # conv2 slab width
    KO = _round_up(W * Cout, 128)    # conv2 output width

    band1 = _band_np(w1, W, K1, K2)
    band2 = _band_np(w2, W, K2, KO)

    b1row = np.zeros((1, K2), np.float32)
    b1row[0, :W * Cmid] = np.repeat(b1, W)          # channel-major: o*W + x
    b2row = np.zeros((1, KO), np.float32)
    b2row[0, :W * Cout] = np.repeat(b2, W)

    # Row pooling (1/K^2 folded in) and column pooling for AvgPool2d(K), floor.
    py = np.zeros((NB * Ho, R - 2), np.float32)
    inv = 1.0 / float(K * K)
    for b in range(NB):
        for oy in range(Ho):
            py[b * Ho + oy, b * Hb + oy * K: b * Hb + oy * K + K] = inv
    qc = np.zeros((KO, Cout * Wo), np.float32)
    for o in range(Cout):
        for ox in range(Wo):
            qc[o * W + ox * K: o * W + ox * K + K, o * Wo + ox] = 1.0

    consts = dict(band1=jnp.asarray(band1), band2=jnp.asarray(band2),
                  b1row=jnp.asarray(b1row), b2row=jnp.asarray(b2row),
                  py=jnp.asarray(py), qc=jnp.asarray(qc))
    meta = dict(NB=NB, H=H, W=W, Cin=Cin, Cmid=Cmid, Cout=Cout,
                Ho=Ho, Wo=Wo, K1=K1, K2=K2, KO=KO)
    return consts, meta


# -----------------------------------------------------------------------------
# Fused kernel: NCHW scatter -> conv3x3+ReLU -> conv3x3+ReLU -> AvgPool2d(K).
# Whole batch block processed in one grid step; activations never leave VMEM.
# -----------------------------------------------------------------------------
def _basenet_fused_kernel(x_ref, w1_ref, b1_ref, w2_ref, b2_ref, py_ref, q_ref,
                          o_ref, a1_ref, a2_ref,
                          *, NB, H, W, Cin, Cmid, Cout, Ho, Wo):
    Hb = H + 2
    R = NB * Hb
    K1 = a1_ref.shape[1]
    K2 = a2_ref.shape[1]

    # --- zero ONLY the regions not overwritten below (halo rows + pad columns)
    z1 = jnp.zeros((1, K1), jnp.float32)
    z2 = jnp.zeros((1, K2), jnp.float32)
    if K1 > W * Cin:                                   # lane-alignment tail
        a1_ref[:, W * Cin:] = jnp.zeros((R, K1 - W * Cin), jnp.float32)
    for b in range(NB):
        for r in (b * Hb, b * Hb + Hb - 1):            # top / bottom halo rows
            a1_ref[pl.ds(r, 1), :] = z1
            a2_ref[pl.ds(r, 1), :] = z2

    # --- scatter NCHW input into the channel-major, lane-dense padded slab
    for b in range(NB):
        for c in range(Cin):
            a1_ref[pl.ds(b * Hb + 1, H), pl.ds(c * W, W)] = x_ref[b, c]

    # --- Conv1 + ReLU : 3 banded MXU matmuls --------------------------------
    a1 = a1_ref[...]
    o1 = jnp.dot(a1[0:R - 2], w1_ref[0], preferred_element_type=jnp.float32)
    o1 = o1 + jnp.dot(a1[1:R - 1], w1_ref[1], preferred_element_type=jnp.float32)
    o1 = o1 + jnp.dot(a1[2:R], w1_ref[2], preferred_element_type=jnp.float32)
    o1 = jnp.maximum(o1 + b1_ref[...], 0.0)            # (R-2, K2)

    # place image rows of o1 into conv2's padded slab (halo rows stay zero)
    for b in range(NB):
        a2_ref[pl.ds(b * Hb + 1, H), :] = o1[b * Hb: b * Hb + H, :]

    # --- Conv2 + ReLU --------------------------------------------------------
    a2 = a2_ref[...]
    o2 = jnp.dot(a2[0:R - 2], w2_ref[0], preferred_element_type=jnp.float32)
    o2 = o2 + jnp.dot(a2[1:R - 1], w2_ref[1], preferred_element_type=jnp.float32)
    o2 = o2 + jnp.dot(a2[2:R], w2_ref[2], preferred_element_type=jnp.float32)
    o2 = jnp.maximum(o2 + b2_ref[...], 0.0)            # (R-2, KO)

    # --- AvgPool2d(K), floor mode: two constant matmuls in the epilogue ------
    pooled = jnp.dot(py_ref[...], o2, preferred_element_type=jnp.float32)
    pooled = jnp.dot(pooled, q_ref[...], preferred_element_type=jnp.float32)
    # pooled: (NB*Ho, Cout*Wo), rows = (b, oy), cols = (o, ox)
    for b in range(NB):
        o_ref[b] = pooled[b * Ho:(b + 1) * Ho, :].astype(o_ref.dtype)


# -----------------------------------------------------------------------------
# Forward wrapper: a single pallas_call (+ one 64-element output transpose).
# -----------------------------------------------------------------------------
def basenet_forward(consts, meta, x_nchw):
    """Pallas implementation of BaseNet(backbone, global_pool='avg').forward."""
    # global_pool='max' / None would only change the kernel epilogue.
    N, Cin, H, W = x_nchw.shape
    NB, Cmid, Cout = meta["NB"], meta["Cmid"], meta["Cout"]
    Ho, Wo = meta["Ho"], meta["Wo"]
    K1, K2, KO = meta["K1"], meta["K2"], meta["KO"]
    assert Cin == meta["Cin"] and H == meta["H"] and W == meta["W"]
    Hb = H + 2
    R = NB * Hb

    kernel = functools.partial(_basenet_fused_kernel,
                               NB=NB, H=H, W=W, Cin=Cin, Cmid=Cmid, Cout=Cout,
                               Ho=Ho, Wo=Wo)

    out = pl.pallas_call(
        kernel,
        out_shape=jax.ShapeDtypeStruct((N, Ho, Cout * Wo), jnp.float32),
        grid=(N // NB,),
        in_specs=[
            pl.BlockSpec((NB, Cin, H, W), lambda g: (g, 0, 0, 0)),   # x (NCHW)
            pl.BlockSpec((3, K1, K2), lambda g: (0, 0, 0)),          # band1
            pl.BlockSpec((1, K2), lambda g: (0, 0)),                 # bias1 row
            pl.BlockSpec((3, K2, KO), lambda g: (0, 0, 0)),          # band2
            pl.BlockSpec((1, KO), lambda g: (0, 0)),                 # bias2 row
            pl.BlockSpec((NB * Ho, R - 2), lambda g: (0, 0)),        # row pool
            pl.BlockSpec((KO, Cout * Wo), lambda g: (0, 0)),         # col pool
        ],
        out_specs=pl.BlockSpec((NB, Ho, Cout * Wo), lambda g: (g, 0, 0)),
        scratch_shapes=[
            pltpu.VMEM((R, K1), jnp.float32),    # padded conv1 input slab
            pltpu.VMEM((R, K2), jnp.float32),    # padded conv2 input slab
        ],
        compiler_params=pltpu.CompilerParams(
            dimension_semantics=("parallel",)),  # 2 TCs on v7x if grid > 1
    )(x_nchw, consts["band1"], consts["b1row"], consts["band2"],
      consts["b2row"], consts["py"], consts["qc"])

    # (N, Ho, Cout*Wo) with cols (o, ox)  ->  NCHW (N, Cout, Ho, Wo); tiny.
    return jnp.transpose(out.reshape(N, Ho, Cout, Wo), (0, 2, 1, 3))


# -----------------------------------------------------------------------------
# Parameter init + pure-JAX reference (correctness check only).
# -----------------------------------------------------------------------------
def init_params(key, cin=4, cmid=8, cout=8):
    k1, k2, k3, k4 = jax.random.split(key, 4)
    s1 = 1.0 / jnp.sqrt(cin * 9)
    s2 = 1.0 / jnp.sqrt(cmid * 9)
    return {
        "w1": jax.random.uniform(k1, (3, 3, cin, cmid), jnp.float32, -s1, s1),
        "b1": jax.random.uniform(k2, (cmid,), jnp.float32, -s1, s1),
        "w2": jax.random.uniform(k3, (3, 3, cmid, cout), jnp.float32, -s2, s2),
        "b2": jax.random.uniform(k4, (cout,), jnp.float32, -s2, s2),
    }


def _ref_forward(params, x_nchw, poolkernel=7):
    x = jnp.transpose(x_nchw, (0, 2, 3, 1))
    for w, b in ((params["w1"], params["b1"]), (params["w2"], params["b2"])):
        x = jax.lax.conv_general_dilated(
            x, w, window_strides=(1, 1), padding="SAME",
            dimension_numbers=("NHWC", "HWIO", "NHWC"))
        x = jnp.maximum(x + b, 0.0)
    K = poolkernel
    x = jax.lax.reduce_window(x, 0.0, jax.lax.add,
                              (1, K, K, 1), (1, K, K, 1), "VALID") / (K * K)
    return jnp.transpose(x, (0, 3, 1, 2))


if __name__ == "__main__":
    key = jax.random.PRNGKey(0)
    kx, kp = jax.random.split(key)

    # Small shapes consistent with the module: NCHW input for a conv backbone.
    x = jax.random.normal(kx, (2, 4, 16, 16), jnp.float32)
    params = init_params(kp, cin=4, cmid=8, cout=8)

    # One-time constant prep (hoisted out of the forward path).
    consts, meta = prepare_basenet(params, batch=2, H=16, W=16, poolkernel=7)

    fwd = jax.jit(functools.partial(basenet_forward, consts, meta))
    out = jax.block_until_ready(fwd(x))

    ref = _ref_forward(params, x, poolkernel=7)
    assert out.shape == (2, 8, 2, 2), out.shape
    assert jnp.allclose(out, ref, atol=1e-4, rtol=1e-4), "mismatch vs reference"

    print("KERNEL_OK")
</pallas_src>

<mosaic_0001>
module attributes {stable_mosaic.version = 11 : i64} {
  func.func @_basenet_fused_kernel(%arg0: i32, %arg1: memref<2x4x16x16xf32, #tpu.memory_space<vmem>>, %arg2: memref<3x128x128xf32, #tpu.memory_space<vmem>>, %arg3: memref<1x128xf32, #tpu.memory_space<vmem>>, %arg4: memref<3x128x128xf32, #tpu.memory_space<vmem>>, %arg5: memref<1x128xf32, #tpu.memory_space<vmem>>, %arg6: memref<4x34xf32, #tpu.memory_space<vmem>>, %arg7: memref<128x16xf32, #tpu.memory_space<vmem>>, %arg8: memref<2x2x16xf32, #tpu.memory_space<vmem>>, %arg9: memref<36x128xf32, #tpu.memory_space<vmem>>, %arg10: memref<36x128xf32, #tpu.memory_space<vmem>>) attributes {dimension_semantics = [#tpu.dimension_semantics<parallel>], iteration_bounds = array<i64: 1>, scalar_prefetch = 0 : i64, scratch_operands = 2 : i64, tpu.core_type = #tpu.core_type<tc>, window_params = [{transform_indices = @transform_0, window_bounds = array<i64: 2, 4, 16, 16>}, {pipeline_mode = #tpu.pipeline_mode<synchronous>, transform_indices = @transform_1, window_bounds = array<i64: 3, 128, 128>}, {pipeline_mode = #tpu.pipeline_mode<synchronous>, transform_indices = @transform_2, window_bounds = array<i64: 1, 128>}, {pipeline_mode = #tpu.pipeline_mode<synchronous>, transform_indices = @transform_3, window_bounds = array<i64: 3, 128, 128>}, {pipeline_mode = #tpu.pipeline_mode<synchronous>, transform_indices = @transform_4, window_bounds = array<i64: 1, 128>}, {pipeline_mode = #tpu.pipeline_mode<synchronous>, transform_indices = @transform_5, window_bounds = array<i64: 4, 34>}, {pipeline_mode = #tpu.pipeline_mode<synchronous>, transform_indices = @transform_6, window_bounds = array<i64: 128, 16>}, {transform_indices = @transform_7, window_bounds = array<i64: 2, 2, 16>}]} {
    %cst = arith.constant 0.000000e+00 : f32
    %0 = vector.broadcast %cst : f32 to vector<1x128xf32>
    %cst_0 = arith.constant 0.000000e+00 : f32
    %1 = vector.broadcast %cst_0 : f32 to vector<1x128xf32>
    %cst_1 = arith.constant 0.000000e+00 : f32
    %2 = vector.broadcast %cst_1 : f32 to vector<36x64xf32>
    %c0 = arith.constant 0 : index
    %c64 = arith.constant 64 : index
    %3 = vector.load %arg9[%c0, %c64] : memref<36x128xf32, #tpu.memory_space<vmem>>, vector<36x64xf32>
    tpu.vector_store %arg9[%c0, %c64], %2 {strides = array<i32>} : memref<36x128xf32, #tpu.memory_space<vmem>>, vector<36x64xf32>,
    %c0_2 = arith.constant 0 : index
    %c0_3 = arith.constant 0 : index
    %4 = vector.load %arg9[%c0_2, %c0_3] : memref<36x128xf32, #tpu.memory_space<vmem>>, vector<1x128xf32>
    tpu.vector_store %arg9[%c0_2, %c0_3], %0 {strides = array<i32>} : memref<36x128xf32, #tpu.memory_space<vmem>>, vector<1x128xf32>,
    %c0_4 = arith.constant 0 : index
    %c0_5 = arith.constant 0 : index
    %5 = vector.load %arg10[%c0_4, %c0_5] : memref<36x128xf32, #tpu.memory_space<vmem>>, vector<1x128xf32>
    tpu.vector_store %arg10[%c0_4, %c0_5], %1 {strides = array<i32>} : memref<36x128xf32, #tpu.memory_space<vmem>>, vector<1x128xf32>,
    %c17 = arith.constant 17 : index
    %c0_6 = arith.constant 0 : index
    %6 = vector.load %arg9[%c17, %c0_6] : memref<36x128xf32, #tpu.memory_space<vmem>>, vector<1x128xf32>
    tpu.vector_store %arg9[%c17, %c0_6], %0 {strides = array<i32>} : memref<36x128xf32, #tpu.memory_space<vmem>>, vector<1x128xf32>,
    %c17_7 = arith.constant 17 : index
    %c0_8 = arith.constant 0 : index
    %7 = vector.load %arg10[%c17_7, %c0_8] : memref<36x128xf32, #tpu.memory_space<vmem>>, vector<1x128xf32>
    tpu.vector_store %arg10[%c17_7, %c0_8], %1 {strides = array<i32>} : memref<36x128xf32, #tpu.memory_space<vmem>>, vector<1x128xf32>,
    %c18 = arith.constant 18 : index
    %c0_9 = arith.constant 0 : index
    %8 = vector.load %arg9[%c18, %c0_9] : memref<36x128xf32, #tpu.memory_space<vmem>>, vector<1x128xf32>
    tpu.vector_store %arg9[%c18, %c0_9], %0 {strides = array<i32>} : memref<36x128xf32, #tpu.memory_space<vmem>>, vector<1x128xf32>,
    %c18_10 = arith.constant 18 : index
    %c0_11 = arith.constant 0 : index
    %9 = vector.load %arg10[%c18_10, %c0_11] : memref<36x128xf32, #tpu.memory_space<vmem>>, vector<1x128xf32>
    tpu.vector_store %arg10[%c18_10, %c0_11], %1 {strides = array<i32>} : memref<36x128xf32, #tpu.memory_space<vmem>>, vector<1x128xf32>,
    %c35 = arith.constant 35 : index
    %c0_12 = arith.constant 0 : index
    %10 = vector.load %arg9[%c35, %c0_12] : memref<36x128xf32, #tpu.memory_space<vmem>>, vector<1x128xf32>
    tpu.vector_store %arg9[%c35, %c0_12], %0 {strides = array<i32>} : memref<36x128xf32, #tpu.memory_space<vmem>>, vector<1x128xf32>,
    %c35_13 = arith.constant 35 : index
    %c0_14 = arith.constant 0 : index
    %11 = vector.load %arg10[%c35_13, %c0_14] : memref<36x128xf32, #tpu.memory_space<vmem>>, vector<1x128xf32>
    tpu.vector_store %arg10[%c35_13, %c0_14], %1 {strides = array<i32>} : memref<36x128xf32, #tpu.memory_space<vmem>>, vector<1x128xf32>,
    %c0_15 = arith.constant 0 : index
    %c0_16 = arith.constant 0 : index
    %c0_17 = arith.constant 0 : index
    %c0_18 = arith.constant 0 : index
    %12 = vector.load %arg1[%c0_15, %c0_16, %c0_17, %c0_18] : memref<2x4x16x16xf32, #tpu.memory_space<vmem>>, vector<1x1x16x16xf32>
    %13 = vector.shape_cast %12 : vector<1x1x16x16xf32> to vector<16x16xf32>
    %c1 = arith.constant 1 : index
    %c0_19 = arith.constant 0 : index
    %14 = vector.load %arg9[%c1, %c0_19] : memref<36x128xf32, #tpu.memory_space<vmem>>, vector<16x16xf32>
    tpu.vector_store %arg9[%c1, %c0_19], %13 {strides = array<i32>} : memref<36x128xf32, #tpu.memory_space<vmem>>, vector<16x16xf32>,
    %c0_20 = arith.constant 0 : index
    %c1_21 = arith.constant 1 : index
    %c0_22 = arith.constant 0 : index
    %c0_23 = arith.constant 0 : index
    %15 = vector.load %arg1[%c0_20, %c1_21, %c0_22, %c0_23] : memref<2x4x16x16xf32, #tpu.memory_space<vmem>>, vector<1x1x16x16xf32>
    %16 = vector.shape_cast %15 : vector<1x1x16x16xf32> to vector<16x16xf32>
    %c1_24 = arith.constant 1 : index
    %c16 = arith.constant 16 : index
    %17 = vector.load %arg9[%c1_24, %c16] : memref<36x128xf32, #tpu.memory_space<vmem>>, vector<16x16xf32>
    tpu.vector_store %arg9[%c1_24, %c16], %16 {strides = array<i32>} : memref<36x128xf32, #tpu.memory_space<vmem>>, vector<16x16xf32>,
    %c0_25 = arith.constant 0 : index
    %c2 = arith.constant 2 : index
    %c0_26 = arith.constant 0 : index
    %c0_27 = arith.constant 0 : index
    %18 = vector.load %arg1[%c0_25, %c2, %c0_26, %c0_27] : memref<2x4x16x16xf32, #tpu.memory_space<vmem>>, vector<1x1x16x16xf32>
    %19 = vector.shape_cast %18 : vector<1x1x16x16xf32> to vector<16x16xf32>
    %c1_28 = arith.constant 1 : index
    %c32 = arith.constant 32 : index
    %20 = vector.load %arg9[%c1_28, %c32] : memref<36x128xf32, #tpu.memory_space<vmem>>, vector<16x16xf32>
    tpu.vector_store %arg9[%c1_28, %c32], %19 {strides = array<i32>} : memref<36x128xf32, #tpu.memory_space<vmem>>, vector<16x16xf32>,
    %c0_29 = arith.constant 0 : index
    %c3 = arith.constant 3 : index
    %c0_30 = arith.constant 0 : index
    %c0_31 = arith.constant 0 : index
    %21 = vector.load %arg1[%c0_29, %c3, %c0_30, %c0_31] : memref<2x4x16x16xf32, #tpu.memory_space<vmem>>, vector<1x1x16x16xf32>
    %22 = vector.shape_cast %21 : vector<1x1x16x16xf32> to vector<16x16xf32>
    %c1_32 = arith.constant 1 : index
    %c48 = arith.constant 48 : index
    %23 = vector.load %arg9[%c1_32, %c48] : memref<36x128xf32, #tpu.memory_space<vmem>>, vector<16x16xf32>
    tpu.vector_store %arg9[%c1_32, %c48], %22 {strides = array<i32>} : memref<36x128xf32, #tpu.memory_space<vmem>>, vector<16x16xf32>,
    %c1_33 = arith.constant 1 : index
    %c0_34 = arith.constant 0 : index
    %c0_35 = arith.constant 0 : index
    %c0_36 = arith.constant 0 : index
    %24 = vector.load %arg1[%c1_33, %c0_34, %c0_35, %c0_36] : memref<2x4x16x16xf32, #tpu.memory_space<vmem>>, vector<1x1x16x16xf32>
    %25 = vector.shape_cast %24 : vector<1x1x16x16xf32> to vector<16x16xf32>
    %c19 = arith.constant 19 : index
    %c0_37 = arith.constant 0 : index
    %26 = vector.load %arg9[%c19, %c0_37] : memref<36x128xf32, #tpu.memory_space<vmem>>, vector<16x16xf32>
    tpu.vector_store %arg9[%c19, %c0_37], %25 {strides = array<i32>} : memref<36x128xf32, #tpu.memory_space<vmem>>, vector<16x16xf32>,
    %c1_38 = arith.constant 1 : index
    %c1_39 = arith.constant 1 : index
    %c0_40 = arith.constant 0 : index
    %c0_41 = arith.constant 0 : index
    %27 = vector.load %arg1[%c1_38, %c1_39, %c0_40, %c0_41] : memref<2x4x16x16xf32, #tpu.memory_space<vmem>>, vector<1x1x16x16xf32>
    %28 = vector.shape_cast %27 : vector<1x1x16x16xf32> to vector<16x16xf32>
    %c19_42 = arith.constant 19 : index
    %c16_43 = arith.constant 16 : index
    %29 = vector.load %arg9[%c19_42, %c16_43] : memref<36x128xf32, #tpu.memory_space<vmem>>, vector<16x16xf32>
    tpu.vector_store %arg9[%c19_42, %c16_43], %28 {strides = array<i32>} : memref<36x128xf32, #tpu.memory_space<vmem>>, vector<16x16xf32>,
    %c1_44 = arith.constant 1 : index
    %c2_45 = arith.constant 2 : index
    %c0_46 = arith.constant 0 : index
    %c0_47 = arith.constant 0 : index
    %30 = vector.load %arg1[%c1_44, %c2_45, %c0_46, %c0_47] : memref<2x4x16x16xf32, #tpu.memory_space<vmem>>, vector<1x1x16x16xf32>
    %31 = vector.shape_cast %30 : vector<1x1x16x16xf32> to vector<16x16xf32>
    %c19_48 = arith.constant 19 : index
    %c32_49 = arith.constant 32 : index
    %32 = vector.load %arg9[%c19_48, %c32_49] : memref<36x128xf32, #tpu.memory_space<vmem>>, vector<16x16xf32>
    tpu.vector_store %arg9[%c19_48, %c32_49], %31 {strides = array<i32>} : memref<36x128xf32, #tpu.memory_space<vmem>>, vector<16x16xf32>,
    %c1_50 = arith.constant 1 : index
    %c3_51 = arith.constant 3 : index
    %c0_52 = arith.constant 0 : index
    %c0_53 = arith.constant 0 : index
    %33 = vector.load %arg1[%c1_50, %c3_51, %c0_52, %c0_53] : memref<2x4x16x16xf32, #tpu.memory_space<vmem>>, vector<1x1x16x16xf32>
    %34 = vector.shape_cast %33 : vector<1x1x16x16xf32> to vector<16x16xf32>
    %c19_54 = arith.constant 19 : index
    %c48_55 = arith.constant 48 : index
    %35 = vector.load %arg9[%c19_54, %c48_55] : memref<36x128xf32, #tpu.memory_space<vmem>>, vector<16x16xf32>
    tpu.vector_store %arg9[%c19_54, %c48_55], %34 {strides = array<i32>} : memref<36x128xf32, #tpu.memory_space<vmem>>, vector<16x16xf32>,
    %c0_56 = arith.constant 0 : index
    %c0_57 = arith.constant 0 : index
    %36 = vector.load %arg9[%c0_56, %c0_57] : memref<36x128xf32, #tpu.memory_space<vmem>>, vector<36x128xf32>
    %37 = vector.extract_strided_slice %36 {offsets = [0, 0], sizes = [34, 128], strides = [1, 1]} : vector<36x128xf32> to vector<34x128xf32>
    %c0_58 = arith.constant 0 : index
    %c0_59 = arith.constant 0 : index
    %c0_60 = arith.constant 0 : index
    %38 = vector.load %arg2[%c0_58, %c0_59, %c0_60] : memref<3x128x128xf32, #tpu.memory_space<vmem>>, vector<1x128x128xf32>
    %39 = vector.shape_cast %38 : vector<1x128x128xf32> to vector<128x128xf32>
    %cst_61 = arith.constant dense<0.000000e+00> : vector<34x128xf32>
    %40 = tpu.matmul %37, %39, %cst_61 {dimension_numbers = #tpu.dot_dimension_numbers<[1], [0], [0], [1], [0, 0, 1, 1], [], []>} : vector<34x128xf32>, vector<128x128xf32>, vector<34x128xf32> -> vector<34x128xf32>
    %41 = vector.extract_strided_slice %36 {offsets = [1, 0], sizes = [34, 128], strides = [1, 1]} : vector<36x128xf32> to vector<34x128xf32>
    %c1_62 = arith.constant 1 : index
    %c0_63 = arith.constant 0 : index
    %c0_64 = arith.constant 0 : index
    %42 = vector.load %arg2[%c1_62, %c0_63, %c0_64] : memref<3x128x128xf32, #tpu.memory_space<vmem>>, vector<1x128x128xf32>
    %43 = vector.shape_cast %42 : vector<1x128x128xf32> to vector<128x128xf32>
    %cst_65 = arith.constant dense<0.000000e+00> : vector<34x128xf32>
    %44 = tpu.matmul %41, %43, %cst_65 {dimension_numbers = #tpu.dot_dimension_numbers<[1], [0], [0], [1], [0, 0, 1, 1], [], []>} : vector<34x128xf32>, vector<128x128xf32>, vector<34x128xf32> -> vector<34x128xf32>
    %45 = arith.addf %40, %44 : vector<34x128xf32>
    %46 = vector.extract_strided_slice %36 {offsets = [2, 0], sizes = [34, 128], strides = [1, 1]} : vector<36x128xf32> to vector<34x128xf32>
    %c2_66 = arith.constant 2 : index
    %c0_67 = arith.constant 0 : index
    %c0_68 = arith.constant 0 : index
    %47 = vector.load %arg2[%c2_66, %c0_67, %c0_68] : memref<3x128x128xf32, #tpu.memory_space<vmem>>, vector<1x128x128xf32>
    %48 = vector.shape_cast %47 : vector<1x128x128xf32> to vector<128x128xf32>
    %cst_69 = arith.constant dense<0.000000e+00> : vector<34x128xf32>
    %49 = tpu.matmul %46, %48, %cst_69 {dimension_numbers = #tpu.dot_dimension_numbers<[1], [0], [0], [1], [0, 0, 1, 1], [], []>} : vector<34x128xf32>, vector<128x128xf32>, vector<34x128xf32> -> vector<34x128xf32>
    %50 = arith.addf %45, %49 : vector<34x128xf32>
    %c0_70 = arith.constant 0 : index
    %c0_71 = arith.constant 0 : index
    %51 = vector.load %arg3[%c0_70, %c0_71] : memref<1x128xf32, #tpu.memory_space<vmem>>, vector<1x128xf32>
    %52 = vector.broadcast %51 : vector<1x128xf32> to vector<34x128xf32>
    %53 = arith.addf %50, %52 : vector<34x128xf32>
    %cst_72 = arith.constant 0.000000e+00 : f32
    %54 = vector.broadcast %cst_72 : f32 to vector<34x128xf32>
    %55 = arith.maximumf %53, %54 : vector<34x128xf32>
    %56 = vector.extract_strided_slice %55 {offsets = [0, 0], sizes = [16, 128], strides = [1, 1]} : vector<34x128xf32> to vector<16x128xf32>
    %c1_73 = arith.constant 1 : index
    %c0_74 = arith.constant 0 : index
    %57 = vector.load %arg10[%c1_73, %c0_74] : memref<36x128xf32, #tpu.memory_space<vmem>>, vector<16x128xf32>
    tpu.vector_store %arg10[%c1_73, %c0_74], %56 {strides = array<i32>} : memref<36x128xf32, #tpu.memory_space<vmem>>, vector<16x128xf32>,
    %58 = vector.extract_strided_slice %55 {offsets = [18, 0], sizes = [16, 128], strides = [1, 1]} : vector<34x128xf32> to vector<16x128xf32>
    %c19_75 = arith.constant 19 : index
    %c0_76 = arith.constant 0 : index
    %59 = vector.load %arg10[%c19_75, %c0_76] : memref<36x128xf32, #tpu.memory_space<vmem>>, vector<16x128xf32>
    tpu.vector_store %arg10[%c19_75, %c0_76], %58 {strides = array<i32>} : memref<36x128xf32, #tpu.memory_space<vmem>>, vector<16x128xf32>,
    %c0_77 = arith.constant 0 : index
    %c0_78 = arith.constant 0 : index
    %60 = vector.load %arg10[%c0_77, %c0_78] : memref<36x128xf32, #tpu.memory_space<vmem>>, vector<36x128xf32>
    %61 = vector.extract_strided_slice %60 {offsets = [0, 0], sizes = [34, 128], strides = [1, 1]} : vector<36x128xf32> to vector<34x128xf32>
    %c0_79 = arith.constant 0 : index
    %c0_80 = arith.constant 0 : index
    %c0_81 = arith.constant 0 : index
    %62 = vector.load %arg4[%c0_79, %c0_80, %c0_81] : memref<3x128x128xf32, #tpu.memory_space<vmem>>, vector<1x128x128xf32>
    %63 = vector.shape_cast %62 : vector<1x128x128xf32> to vector<128x128xf32>
    %cst_82 = arith.constant dense<0.000000e+00> : vector<34x128xf32>
    %64 = tpu.matmul %61, %63, %cst_82 {dimension_numbers = #tpu.dot_dimension_numbers<[1], [0], [0], [1], [0, 0, 1, 1], [], []>} : vector<34x128xf32>, vector<128x128xf32>, vector<34x128xf32> -> vector<34x128xf32>
    %65 = vector.extract_strided_slice %60 {offsets = [1, 0], sizes = [34, 128], strides = [1, 1]} : vector<36x128xf32> to vector<34x128xf32>
    %c1_83 = arith.constant 1 : index
    %c0_84 = arith.constant 0 : index
    %c0_85 = arith.constant 0 : index
    %66 = vector.load %arg4[%c1_83, %c0_84, %c0_85] : memref<3x128x128xf32, #tpu.memory_space<vmem>>, vector<1x128x128xf32>
    %67 = vector.shape_cast %66 : vector<1x128x128xf32> to vector<128x128xf32>
    %cst_86 = arith.constant dense<0.000000e+00> : vector<34x128xf32>
    %68 = tpu.matmul %65, %67, %cst_86 {dimension_numbers = #tpu.dot_dimension_numbers<[1], [0], [0], [1], [0, 0, 1, 1], [], []>} : vector<34x128xf32>, vector<128x128xf32>, vector<34x128xf32> -> vector<34x128xf32>
    %69 = arith.addf %64, %68 : vector<34x128xf32>
    %70 = vector.extract_strided_slice %60 {offsets = [2, 0], sizes = [34, 128], strides = [1, 1]} : vector<36x128xf32> to vector<34x128xf32>
    %c2_87 = arith.constant 2 : index
    %c0_88 = arith.constant 0 : index
    %c0_89 = arith.constant 0 : index
    %71 = vector.load %arg4[%c2_87, %c0_88, %c0_89] : memref<3x128x128xf32, #tpu.memory_space<vmem>>, vector<1x128x128xf32>
    %72 = vector.shape_cast %71 : vector<1x128x128xf32> to vector<128x128xf32>
    %cst_90 = arith.constant dense<0.000000e+00> : vector<34x128xf32>
    %73 = tpu.matmul %70, %72, %cst_90 {dimension_numbers = #tpu.dot_dimension_numbers<[1], [0], [0], [1], [0, 0, 1, 1], [], []>} : vector<34x128xf32>, vector<128x128xf32>, vector<34x128xf32> -> vector<34x128xf32>
    %74 = arith.addf %69, %73 : vector<34x128xf32>
    %c0_91 = arith.constant 0 : index
    %c0_92 = arith.constant 0 : index
    %75 = vector.load %arg5[%c0_91, %c0_92] : memref<1x128xf32, #tpu.memory_space<vmem>>, vector<1x128xf32>
    %76 = vector.broadcast %75 : vector<1x128xf32> to vector<34x128xf32>
    %77 = arith.addf %74, %76 : vector<34x128xf32>
    %cst_93 = arith.constant 0.000000e+00 : f32
    %78 = vector.broadcast %cst_93 : f32 to vector<34x128xf32>
    %79 = arith.maximumf %77, %78 : vector<34x128xf32>
    %c0_94 = arith.constant 0 : index
    %c0_95 = arith.constant 0 : index
    %80 = vector.load %arg6[%c0_94, %c0_95] : memref<4x34xf32, #tpu.memory_space<vmem>>, vector<4x34xf32>
    %cst_96 = arith.constant dense<0.000000e+00> : vector<4x128xf32>
    %81 = tpu.matmul %80, %79, %cst_96 {dimension_numbers = #tpu.dot_dimension_numbers<[1], [0], [0], [1], [0, 0, 1, 1], [], []>} : vector<4x34xf32>, vector<34x128xf32>, vector<4x128xf32> -> vector<4x128xf32>
    %c0_97 = arith.constant 0 : index
    %c0_98 = arith.constant 0 : index
    %82 = vector.load %arg7[%c0_97, %c0_98] : memref<128x16xf32, #tpu.memory_space<vmem>>, vector<128x16xf32>
    %cst_99 = arith.constant dense<0.000000e+00> : vector<4x16xf32>
    %83 = tpu.matmul %81, %82, %cst_99 {dimension_numbers = #tpu.dot_dimension_numbers<[1], [0], [0], [1], [0, 0, 1, 1], [], []>} : vector<4x128xf32>, vector<128x16xf32>, vector<4x16xf32> -> vector<4x16xf32>
    %84 = vector.extract_strided_slice %83 {offsets = [0, 0], sizes = [2, 16], strides = [1, 1]} : vector<4x16xf32> to vector<2x16xf32>
    %c0_100 = arith.constant 0 : index
    %c0_101 = arith.constant 0 : index
    %c0_102 = arith.constant 0 : index
    %85 = vector.load %arg8[%c0_100, %c0_101, %c0_102] : memref<2x2x16xf32, #tpu.memory_space<vmem>>, vector<1x2x16xf32>
    %86 = vector.shape_cast %85 : vector<1x2x16xf32> to vector<2x16xf32>
    %87 = vector.shape_cast %84 : vector<2x16xf32> to vector<1x2x16xf32>
    tpu.vector_store %arg8[%c0_100, %c0_101, %c0_102], %87 {strides = array<i32>} : memref<2x2x16xf32, #tpu.memory_space<vmem>>, vector<1x2x16xf32>,
    %88 = vector.extract_strided_slice %83 {offsets = [2, 0], sizes = [2, 16], strides = [1, 1]} : vector<4x16xf32> to vector<2x16xf32>
    %c1_103 = arith.constant 1 : index
    %c0_104 = arith.constant 0 : index
    %c0_105 = arith.constant 0 : index
    %89 = vector.load %arg8[%c1_103, %c0_104, %c0_105] : memref<2x2x16xf32, #tpu.memory_space<vmem>>, vector<1x2x16xf32>
    %90 = vector.shape_cast %89 : vector<1x2x16xf32> to vector<2x16xf32>
    %91 = vector.shape_cast %88 : vector<2x16xf32> to vector<1x2x16xf32>
    tpu.vector_store %arg8[%c1_103, %c0_104, %c0_105], %91 {strides = array<i32>} : memref<2x2x16xf32, #tpu.memory_space<vmem>>, vector<1x2x16xf32>,
    return
  }
  func.func @transform_0(%arg0: i32) -> (i32, i32, i32, i32) {
    %c0_i32 = arith.constant 0 : i32
    %c0_i32_0 = arith.constant 0 : i32
    %c0_i32_1 = arith.constant 0 : i32
    %c0_i32_2 = arith.constant 0 : i32
    return %arg0, %c0_i32, %c0_i32_0, %c0_i32_1 : i32, i32, i32, i32
  }
  func.func @transform_1(%arg0: i32) -> (i32, i32, i32) {
    %c0_i32 = arith.constant 0 : i32
    %c0_i32_0 = arith.constant 0 : i32
    %c0_i32_1 = arith.constant 0 : i32
    %c0_i32_2 = arith.constant 0 : i32
    return %c0_i32, %c0_i32_0, %c0_i32_1 : i32, i32, i32
  }
  func.func @transform_2(%arg0: i32) -> (i32, i32) {
    %c0_i32 = arith.constant 0 : i32
    %c0_i32_0 = arith.constant 0 : i32
    %c0_i32_1 = arith.constant 0 : i32
    return %c0_i32, %c0_i32_0 : i32, i32
  }
  func.func @transform_3(%arg0: i32) -> (i32, i32, i32) {
    %c0_i32 = arith.constant 0 : i32
    %c0_i32_0 = arith.constant 0 : i32
    %c0_i32_1 = arith.constant 0 : i32
    %c0_i32_2 = arith.constant 0 : i32
    return %c0_i32, %c0_i32_0, %c0_i32_1 : i32, i32, i32
  }
  func.func @transform_4(%arg0: i32) -> (i32, i32) {
    %c0_i32 = arith.constant 0 : i32
    %c0_i32_0 = arith.constant 0 : i32
    %c0_i32_1 = arith.constant 0 : i32
    return %c0_i32, %c0_i32_0 : i32, i32
  }
  func.func @transform_5(%arg0: i32) -> (i32, i32) {
    %c0_i32 = arith.constant 0 : i32
    %c0_i32_0 = arith.constant 0 : i32
    %c0_i32_1 = arith.constant 0 : i32
    return %c0_i32, %c0_i32_0 : i32, i32
  }
  func.func @transform_6(%arg0: i32) -> (i32, i32) {
    %c0_i32 = arith.constant 0 : i32
    %c0_i32_0 = arith.constant 0 : i32
    %c0_i32_1 = arith.constant 0 : i32
    return %c0_i32, %c0_i32_0 : i32, i32
  }
  func.func @transform_7(%arg0: i32) -> (i32, i32, i32) {
    %c0_i32 = arith.constant 0 : i32
    %c0_i32_0 = arith.constant 0 : i32
    %c0_i32_1 = arith.constant 0 : i32
    return %arg0, %c0_i32, %c0_i32_0 : i32, i32, i32
  }
}

</mosaic_0001>

<bundles_post_ra>
// kernel: basenet_forward.1
= control target key start
LH: loop header
LB: loop body
LE: loop exit
PB: predicated region body
PF: predicated region fallthrough
CT: control target
= control target key end

     0   :  { %12 = vsyncpa [#allocation5], 0  ;;  %s2251_s0 = inlined_call_operand.hbm [shape: f32[2,4,16,16], index: 0, kind: input, shape index: {}]   ;;  %s2252_s1 = inlined_call_operand.hbm [shape: f32[3,128,128], index: 1, kind: input, shape index: {}]   ;;  %s2253_s2 = inlined_call_operand.vmem [shape: f32[1,128], index: 2, kind: input, shape index: {}]   ;;  %s2254_s3 = inlined_call_operand.hbm [shape: f32[3,128,128], index: 3, kind: input, shape index: {}]   ;;  %s2255_s4 = inlined_call_operand.vmem [shape: f32[1,128], index: 4, kind: input, shape index: {}]   ;;  %s2256_s5 = inlined_call_operand.vmem [shape: f32[4,34], index: 5, kind: input, shape index: {}]   ;;  %s2257_s6 = inlined_call_operand.hbm [shape: f32[128,16], index: 6, kind: input, shape index: {}]   ;;  %s2258_s7 = inlined_call_operand.vmem [shape: f32[2,2,16], index: 7, kind: output, shape index: {}]  }
   0x1   :  { %13 = vsyncpa [#allocation7], 0 }
   0x2   :  { %14 = vsyncpa [#allocation10], 0  ;;  %s1895_s24 = smov [#allocation6]   ;;  %s1896_s26 = smov [#allocation4]  }
   0x3   :  { %s32_s25 = sshll.u32 %s1895_s24, 4  ;;  %s20_s27 = sshll.u32 %s1896_s26, 4  ;;  %s33_s25 = int_to_ptr.vmem [resolvable:$true] %s32_s25  ;;  %s1947_s27 = int_to_ptr.vmem [resolvable:$true] %s20_s27 }
   0x4   :  { %s1801_s30 = scalar_lea.hbm %s2252_s1, 6144 }
   0x5   :  { %p1802_p0 = scmp.ne.s32.totalorder %s2252_s1, %s1801_s30  ;;  %p1805_p1 = scmp.lt.u32.totalorder %s1801_s30, %s2252_s1 }
   0x7   :  { %p1807_p2 = pnand %p1805_p1, %p1802_p0 }
   0x9   :  { %1810 = shalt.err (!%p1807_p2)
}
   0xa   :  { %s1811_s12 = scalar_lea.vmem %s33_s25, 6144  ;;  %p1816_p4 = scmp.lt.s32.totalorder %s33_s25, %s33_s25 }
   0xb   :  { %p1812_p3 = scmp.ne.s32.totalorder %s33_s25, %s1811_s12  ;;  %p1817_p5 = scmp.lt.s32.totalorder %s1811_s12, %s1811_s12 }
   0xd   :  { %p1818_p6 = por %p1817_p5, %p1816_p4 }
   0xf   :  { %p1819_p7 = pnand %p1818_p6, %p1812_p3 }
  0x11   :  { %1822 = shalt.err (!%p1819_p7)
}
  0x12   :  { %s1897_s13 = smov 128   ;;  %s1898_s14 = smov 8  }
  0x13   :  { %38 = dma.hbm_to_vmem [thread:$0]  %s2252_s1, 6144, %s33_s25, [#allocation7], %s1897_s13, %s1897_s13, %s1898_s14  }
  0x14   :  { %s1823_s19 = scalar_lea.hbm %s2251_s0, 2048 }
  0x15   :  { %p1824_p8 = scmp.ne.s32.totalorder %s2251_s0, %s1823_s19  ;;  %p1827_p9 = scmp.lt.u32.totalorder %s1823_s19, %s2251_s0 }
  0x17   :  { %p1829_p10 = pnand %p1827_p9, %p1824_p8 }
  0x19   :  { %1832 = shalt.err (!%p1829_p10)
}
  0x1a   :  { %s1833_s24 = scalar_lea.vmem %s1947_s27, 2048  ;;  %p1838_p12 = scmp.lt.s32.totalorder %s1947_s27, %s1947_s27 }
  0x1b   :  { %p1834_p11 = scmp.ne.s32.totalorder %s1947_s27, %s1833_s24  ;;  %p1839_p13 = scmp.lt.s32.totalorder %s1833_s24, %s1833_s24 }
  0x1d   :  { %p1840_p0 = por %p1839_p13, %p1838_p12 }
  0x1f   :  { %p1841_p1 = pnand %p1840_p0, %p1834_p11 }
  0x21   :  { %1844 = shalt.err (!%p1841_p1)
}
  0x22   :  { %26 = dma.hbm_to_vmem [thread:$0]  %s2251_s0, 2048, %s1947_s27, [#allocation5], %s1897_s13, %s1897_s13, %s1898_s14  }
  0x23   :  { %s1899_s26 = smov [#allocation8]   ;;  %s1900_s29 = smov [#allocation9]  }
  0x24   :  { %s46_s28 = sshll.u32 %s1899_s26, 4  ;;  %s62_s30 = sshll.u32 %s1900_s29, 4  ;;  %s47_s28 = int_to_ptr.vmem [resolvable:$true] %s46_s28  ;;  %s1984_s30 = int_to_ptr.vmem [resolvable:$true] %s62_s30 }
  0x25   :  { %s1845_s10 = scalar_lea.hbm %s2254_s3, 6144 }
  0x26   :  { %p1846_p2 = scmp.ne.s32.totalorder %s2254_s3, %s1845_s10  ;;  %p1849_p3 = scmp.lt.u32.totalorder %s1845_s10, %s2254_s3 }
  0x28   :  { %p1851_p4 = pnand %p1849_p3, %p1846_p2 }
  0x2a   :  { %1854 = shalt.err (!%p1851_p4)
}
  0x2b   :  { %s1855_s0 = scalar_lea.vmem %s47_s28, 6144  ;;  %p1860_p6 = scmp.lt.s32.totalorder %s47_s28, %s47_s28 }
  0x2c   :  { %p1856_p5 = scmp.ne.s32.totalorder %s47_s28, %s1855_s0  ;;  %p1861_p7 = scmp.lt.s32.totalorder %s1855_s0, %s1855_s0 }
  0x2e   :  { %p1862_p8 = por %p1861_p7, %p1860_p6 }
  0x30   :  { %p1863_p9 = pnand %p1862_p8, %p1856_p5 }
  0x32   :  { %1866 = shalt.err (!%p1863_p9)
}
  0x33   :  { %52 = dma.hbm_to_vmem [thread:$0]  %s2254_s3, 6144, %s47_s28, [#allocation7], %s1897_s13, %s1897_s13, %s1898_s14  }
  0x34   :  { %s1867_s20 = scalar_lea.hbm %s2257_s6, 2048 }
  0x35   :  { %p1868_p10 = scmp.ne.s32.totalorder %s2257_s6, %s1867_s20  ;;  %p1871_p11 = scmp.lt.u32.totalorder %s1867_s20, %s2257_s6 }
  0x37   :  { %p1873_p12 = pnand %p1871_p11, %p1868_p10 }
  0x39   :  { %1876 = shalt.err (!%p1873_p12)
}
  0x3a   :  { %s1877_s1 = scalar_lea.vmem %s1984_s30, 2048  ;;  %p1882_p0 = scmp.lt.s32.totalorder %s1984_s30, %s1984_s30 }
  0x3b   :  { %p1878_p13 = scmp.ne.s32.totalorder %s1984_s30, %s1877_s1  ;;  %p1883_p1 = scmp.lt.s32.totalorder %s1877_s1, %s1877_s1 }
  0x3d   :  { %p1884_p2 = por %p1883_p1, %p1882_p0 }
  0x3f   :  { %p1885_p3 = pnand %p1884_p2, %p1878_p13 }
  0x41   :  { %1888 = shalt.err (!%p1885_p3)
}
  0x42   :  { %68 = dma.hbm_to_vmem [thread:$0]  %s2257_s6, 2048, %s1984_s30, [#allocation10], %s1897_s13, %s1897_s13, %s1898_s14  }
  0x43   :  { %1889 = dma.done.wait [#allocation5], 2048  }
  0x44   :  { %1890 = vsyncadd [#allocation5], 4294965248 }
  0x45   :  { %1891 = dma.done.wait [#allocation7], 12288  }
  0x46   :  { %1892 = vsyncadd [#allocation7], 4294955008 }
  0x47   :  { %1893 = dma.done.wait [#allocation10], 2048  }
  0x48   :  { %1894 = vsyncadd [#allocation10], 4294965248  ;;  %vm81_vm0 = vcmask 1048064   ;;  %v1901_v0 = vmov 0.0|0.0   ;;  %v1902_v1 = vmov 0.0   ;;  %v116_v2 = vld [vmem:[#allocation4 + $0x20] sm:$0xff] }
  0x49   :  { %1639 = vmatprep.subr.bf16.mxu1 %v1901_v0  ;;  %1615 = vmatprep.subr.bf16.mxu0 %v1901_v0  ;;  %82 = vst.msk [vmem:[#allocation2] sm:$0xff] %vm81_vm0, %v1902_v1  ;;  %83 = vst.msk [vmem:[#allocation2 + $0x8] sm:$0xff] %vm81_vm0, %v1902_v1  ;;  %v102_v3 = vld [vmem:[#allocation4 + $0x10] sm:$0xff]  ;;  %s1903_s6 = smov 32   ;;  %s1904_s13 = smov 16   ;;  %v117_v4 = vld [vmem:[#allocation4 + $0x28] sm:$0xff] }
  0x4a   :  { %84 = vst.msk [vmem:[#allocation2 + $0x10] sm:$0xff] %vm81_vm0, %v1902_v1  ;;  %85 = vst.msk [vmem:[#allocation2 + $0x18] sm:$0xff] %vm81_vm0, %v1902_v1  ;;  %120 = vrot.lane.b32.xlu1 %v116_v2, %s1903_s6  ;;  %106 = vrot.lane.b32.xlu0 %v102_v3, %s1904_s13  ;;  %v103_v5 = vld [vmem:[#allocation4 + $0x18] sm:$0xff]  ;;  %vm1905_vm1 = vmmov 0   ;;  %v192_v7 = vld [vmem:[#allocation6] sm:$0xff]  ;;  %vm86_vm2 = vcmask 1043968  }
  0x4b   :  { %89 = vst [vmem:[#allocation3] sm:$0x1] %v1902_v1  ;;  %91 = vst [vmem:[#allocation3 + $0x11] sm:$0x1] %v1902_v1  ;;  %1364 = vmatprep.mubr.msk.f32.mxu1 %vm1905_vm1, %v1902_v1  ;;  %1317 = vmatprep.mubr.msk.f32.mxu0 %vm1905_vm1, %v1902_v1  ;;  %v131_v6 = vld [vmem:[#allocation4 + $0x38] sm:$0xff]  ;;  %v193_v8 = vld [vmem:[#allocation6 + $0x8] sm:$0xff] }
  0x4c   :  { %93 = vst [vmem:[#allocation3 + $0x12] sm:$0x1] %v1902_v1  ;;  %95 = vst [vmem:[#allocation3 + $0x23] sm:$0x1] %v1902_v1  ;;  %v209_v9 = vld [vmem:[#allocation6 + $0x80] sm:$0xff]  ;;  %v1640_v10 = vpack.c.bf16 %v193_v8, %v192_v7  ;;  %v210_v11 = vld [vmem:[#allocation6 + $0x88] sm:$0xff] }
  0x4d   :  { %88 = vst [vmem:[#allocation2] sm:$0x1] %v1902_v1  ;;  %90 = vst [vmem:[#allocation2 + $0x11] sm:$0x1] %v1902_v1  ;;  %v194_v12 = vld [vmem:[#allocation6 + $0x10] sm:$0xff]  ;;  %v195_v13 = vld [vmem:[#allocation6 + $0x18] sm:$0xff]  ;;  %v1616_v15 = vpack.c.bf16 %v210_v11, %v209_v9 }
  0x4e   :  { %92 = vst [vmem:[#allocation2 + $0x12] sm:$0x1] %v1902_v1  ;;  %122 = vrot.lane.b32.xlu1 %v117_v4, %s1903_s6  ;;  %108 = vrot.lane.b32.xlu0 %v103_v5, %s1904_s13  ;;  %87 = vst.msk [vmem:[#allocation2 + $0x20] sm:$0xf] %vm86_vm2, %v1902_v1  ;;  %v130_v14 = vld [vmem:[#allocation4 + $0x30] sm:$0xff]  ;;  %v212_v17 = vld [vmem:[#allocation6 + $0x98] sm:$0xff]  ;;  %v1643_v18 = vpack.c.bf16 %v195_v13, %v194_v12 }
  0x4f   :  { %v211_v16 = vld [vmem:[#allocation6 + $0x90] sm:$0xff]  ;;  %94 = vst [vmem:[#allocation2 + $0x23] sm:$0x1] %v1902_v1  ;;  %1641 = vmatpush3.bf16.msra.mxu1 %v1640_v10  ;;  %vm98_vm3 = vcmask 130048   ;;  %1617 = vmatpush3.bf16.msra.mxu0 %v1616_v15  ;;  %v196_v20 = vld [vmem:[#allocation6 + $0x20] sm:$0xff]  ;;  %v197_v21 = vld [vmem:[#allocation6 + $0x28] sm:$0xff] }
  0x50   :  { %1642 = vmatprep.subr.bf16.mxu1 %v1901_v0  ;;  %v1619_v19 = vpack.c.bf16 %v212_v17, %v211_v16  ;;  %s1906_s14 = smov 48   ;;  %v213_v22 = vld [vmem:[#allocation6 + $0xa0] sm:$0xff]  ;;  %v214_v23 = vld [vmem:[#allocation6 + $0xa8] sm:$0xff]  ;;  %v149_v25 = vld [vmem:[#allocation4 + $0x50] sm:$0xff]  ;;  %1618 = vmatprep.subr.bf16.mxu0 %v1901_v0  ;;  %v1646_v27 = vpack.c.bf16 %v197_v21, %v196_v20  ;;  %vm112_vm4 = vcmask 261248   ;;  %vm126_vm5 = vcmask 392448  }
  0x51   :  { %v96_v24 = vld [vmem:[#allocation4] sm:$0xff]  ;;  %v97_v28 = vld [vmem:[#allocation4 + $0x8] sm:$0xff]  ;;  %v1622_v29 = vpack.c.bf16 %v214_v23, %v213_v22  ;;  %v198_v30 = vld [vmem:[#allocation6 + $0x30] sm:$0xff]  ;;  %vm140_vm6 = vcmask 523648   ;;  %vm230_vm7 = vcmask 1046528   ;;  %vm442_vm8 = vcmask 1045504  }
  0x52   :  { %136 = vrot.lane.b32.xlu1 %v131_v6, %s1906_s14  ;;  %134 = vrot.lane.b32.xlu0 %v130_v14, %s1906_s14  ;;  %v162_v26 = vld [vmem:[#allocation4 + $0x60] sm:$0xff]  ;;  %99 = vst.msk [vmem:[#allocation2 + $0x1] sm:$0xff] %vm98_vm3, %v96_v24  ;;  %v199_v31 = vld [vmem:[#allocation6 + $0x38] sm:$0xff]  ;;  %100 = vst.msk [vmem:[#allocation2 + $0x9] sm:$0xff] %vm98_vm3, %v97_v28  ;;  %vm959_vm9 = vcmask 1041408   ;;  %vm955_vm10 = vcmask 277504  }
  0x53   :  { %1644 = vmatpush3.bf16.msra.mxu1 %v1643_v18  ;;  %1620 = vmatpush3.bf16.msra.mxu0 %v1619_v19  ;;  %v215_v32 = vld [vmem:[#allocation6 + $0xb0] sm:$0xff]  ;;  %v216_v33 = vld [vmem:[#allocation6 + $0xb8] sm:$0xff]  ;;  %v144_v36 = vld [vmem:[#allocation4 + $0x40] sm:$0xff]  ;;  %v1649_v37 = vpack.c.bf16 %v199_v31, %v198_v30  ;;  %vm1119_vm11 = vcmask 123904   ;;  %vm1122_vm12 = vcmask 125954  }
  0x54   :  { %1645 = vmatprep.subr.bf16.mxu1 %v1901_v0  ;;  %v175_v34 = vld [vmem:[#allocation4 + $0x70] sm:$0xff]  ;;  %v150_v35 = vld [vmem:[#allocation4 + $0x58] sm:$0xff]  ;;  %1621 = vmatprep.subr.bf16.mxu0 %v1901_v0  ;;  %146 = vst.msk [vmem:[#allocation2 + $0x13] sm:$0xff] %vm98_vm3, %v144_v36  ;;  %v145_v38 = vld [vmem:[#allocation4 + $0x48] sm:$0xff]  ;;  %v1625_v39 = vpack.c.bf16 %v216_v33, %v215_v32 }
  0x55   :  { %v200_v40 = vld [vmem:[#allocation6 + $0x40] sm:$0xff]  ;;  %v201_v41 = vld [vmem:[#allocation6 + $0x48] sm:$0xff]  ;;  %147 = vst.msk [vmem:[#allocation2 + $0x1b] sm:$0xff] %vm98_vm3, %v145_v38  ;;  %v176_v45 = vld [vmem:[#allocation4 + $0x78] sm:$0xff] }
  0x56   :  { %153 = vrot.lane.b32.xlu0 %v149_v25, %s1904_s13  ;;  %166 = vrot.lane.b32.xlu1 %v162_v26, %s1903_s6  ;;  %v217_v42 = vld [vmem:[#allocation6 + $0xc0] sm:$0xff]  ;;  %v218_v43 = vld [vmem:[#allocation6 + $0xc8] sm:$0xff]  ;;  %v1652_v46 = vpack.c.bf16 %v201_v41, %v200_v40  ;;  %v202_v48 = vld [vmem:[#allocation6 + $0x50] sm:$0xff] }
  0x57   :  { %1647 = vmatpush3.bf16.msra.mxu1 %v1646_v27  ;;  %1623 = vmatpush3.bf16.msra.mxu0 %v1622_v29  ;;  %v163_v44 = vld [vmem:[#allocation4 + $0x68] sm:$0xff]  ;;  %v1628_v47 = vpack.c.bf16 %v218_v43, %v217_v42  ;;  %v203_v49 = vld [vmem:[#allocation6 + $0x58] sm:$0xff]  ;;  %v219_v50 = vld [vmem:[#allocation6 + $0xd0] sm:$0xff] }
  0x58   :  { %1648 = vmatprep.subr.bf16.mxu1 %v1901_v0  ;;  %1624 = vmatprep.subr.bf16.mxu0 %v1901_v0  ;;  %v220_v51 = vld [vmem:[#allocation6 + $0xd8] sm:$0xff]  ;;  %v1655_v52 = vpack.c.bf16 %v203_v49, %v202_v48  ;;  %v204_v54 = vld [vmem:[#allocation6 + $0x60] sm:$0xff]  ;;  %v205_v55 = vld [vmem:[#allocation6 + $0x68] sm:$0xff] }
  0x59   :  { %v1631_v53 = vpack.c.bf16 %v220_v51, %v219_v50  ;;  %v221_v56 = vld [vmem:[#allocation6 + $0xe0] sm:$0xff]  ;;  %v222_v57 = vld [vmem:[#allocation6 + $0xe8] sm:$0xff]  ;;  %v1658_v58 = vpack.c.bf16 %v205_v55, %v204_v54  ;;  %v206_v60 = vld [vmem:[#allocation6 + $0x70] sm:$0xff] }
  0x5a   :  { %179 = vrot.lane.b32.xlu0 %v175_v34, %s1906_s14  ;;  %155 = vrot.lane.b32.xlu1 %v150_v35, %s1904_s13  ;;  %v1634_v59 = vpack.c.bf16 %v222_v57, %v221_v56  ;;  %v207_v61 = vld [vmem:[#allocation6 + $0x78] sm:$0xff]  ;;  %v223_v62 = vld [vmem:[#allocation6 + $0xf0] sm:$0xff]  ;;  %v426_v12 = vld [vmem:[#allocation6 + $0x100] sm:$0xff] }
  0x5b   :  { %1650 = vmatpush3.bf16.msra.mxu1 %v1649_v37  ;;  %1626 = vmatpush3.bf16.msra.mxu0 %v1625_v39  ;;  %v224_v63 = vld [vmem:[#allocation6 + $0xf8] sm:$0xff]  ;;  %v1661_v2 = vpack.c.bf16 %v207_v61, %v206_v60  ;;  %v427_v13 = vld [vmem:[#allocation6 + $0x108] sm:$0xff]  ;;  %v428_v21 = vld [vmem:[#allocation6 + $0x110] sm:$0xff] }
  0x5c   :  { %1651 = vmatprep.subr.bf16.mxu1 %v1901_v0  ;;  %1627 = vmatprep.subr.bf16.mxu0 %v1901_v0  ;;  %v1637_v3 = vpack.c.bf16 %v224_v63, %v223_v62  ;;  %v1664_v20 = vpack.c.bf16 %v427_v13, %v426_v12  ;;  %v429_v22 = vld [vmem:[#allocation6 + $0x118] sm:$0xff]  ;;  %v430_v27 = vld [vmem:[#allocation6 + $0x120] sm:$0xff]  ;;  %v431_v28 = vld [vmem:[#allocation6 + $0x128] sm:$0xff] }
  0x5d   :  { %v1667_v26 = vpack.c.bf16 %v429_v22, %v428_v21  ;;  %v1670_v31 = vpack.c.bf16 %v431_v28, %v430_v27  ;;  %v432_v32 = vld [vmem:[#allocation6 + $0x130] sm:$0xff]  ;;  %v433_v33 = vld [vmem:[#allocation6 + $0x138] sm:$0xff]  ;;  %v434_v39 = vld [vmem:[#allocation6 + $0x140] sm:$0xff] }
  0x5e   :  { %168 = vrot.lane.b32.xlu0 %v163_v44, %s1903_s6  ;;  %181 = vrot.lane.b32.xlu1 %v176_v45, %s1906_s14  ;;  %v1673_v36 = vpack.c.bf16 %v433_v33, %v432_v32  ;;  %v435_v40 = vld [vmem:[#allocation6 + $0x148] sm:$0xff]  ;;  %v436_v44 = vld [vmem:[#allocation6 + $0x150] sm:$0xff]  ;;  %v437_v45 = vld [vmem:[#allocation6 + $0x158] sm:$0xff] }
  0x5f   :  { %1653 = vmatpush3.bf16.msra.mxu1 %v1652_v46  ;;  %1629 = vmatpush3.bf16.msra.mxu0 %v1628_v47  ;;  %v1676_v43 = vpack.c.bf16 %v435_v40, %v434_v39  ;;  %v1679_v47 = vpack.c.bf16 %v437_v45, %v436_v44  ;;  %v438_v48 = vld [vmem:[#allocation6 + $0x160] sm:$0xff]  ;;  %v439_v49 = vld [vmem:[#allocation6 + $0x168] sm:$0xff]  ;;  %v440_v51 = vld [vmem:[#allocation6 + $0x170] sm:$0xff] }
  0x60   :  { %1654 = vmatprep.subr.bf16.mxu1 %v1901_v0  ;;  %1630 = vmatprep.subr.bf16.mxu0 %v1901_v0  ;;  %v1682_v50 = vpack.c.bf16 %v439_v49, %v438_v48  ;;  %v579_v63 = vld [vmem:[#allocation8] sm:$0xff]  ;;  %v598_v13 = vld [vmem:[#allocation8 + $0x90] sm:$0xff]  ;;  %v605_v32 = vld [vmem:[#allocation8 + $0xc8] sm:$0xff] }
  0x61   :  { %v587_v22 = vld [vmem:[#allocation8 + $0x40] sm:$0xff]  ;;  %v589_v28 = vld [vmem:[#allocation8 + $0x50] sm:$0xff]  ;;  %v609_v44 = vld [vmem:[#allocation8 + $0xe8] sm:$0xff] }
  0x62   :  { %v593_v40 = vld [vmem:[#allocation8 + $0x70] sm:$0xff] }
  0x63   :  { %1656 = vmatpush3.bf16.msra.mxu1 %v1655_v52  ;;  %1632 = vmatpush3.bf16.msra.mxu0 %v1631_v53  ;;  %v441_v52 = vld [vmem:[#allocation6 + $0x178] sm:$0xff] }
  0x64   :  { %1657 = vmatprep.subr.bf16.mxu1 %v1901_v0  ;;  %1633 = vmatprep.subr.bf16.mxu0 %v1901_v0  ;;  %v1685_v53 = vpack.c.bf16 %v441_v52, %v440_v51 }
  0x67   :  { %1659 = vmatpush3.bf16.msra.mxu1 %v1658_v58  ;;  %1635 = vmatpush3.bf16.msra.mxu0 %v1634_v59 }
  0x68   :  { %1660 = vmatprep.subr.bf16.mxu1 %v1901_v0  ;;  %1636 = vmatprep.subr.bf16.mxu0 %v1901_v0 }
  0x6b   :  { %1662 = vmatpush3.bf16.msra.mxu1 %v1661_v2  ;;  %1638 = vmatpush3.bf16.msra.mxu0 %v1637_v3  ;;  %v580_v2 = vld [vmem:[#allocation8 + $0x8] sm:$0xff] }
  0x6c   :  { %1687 = vmatprep.subr.bf16.mxu1 %v1901_v0  ;;  %1663 = vmatprep.subr.bf16.mxu0 %v1901_v0  ;;  %v1712_v3 = vpack.c.bf16 %v580_v2, %v579_v63 }
  0xbc   :  { %v121_v4 = vpop.permute.xlu1 %120  ;;  %v107_v5 = vpop.permute.xlu0 %106 }
  0xbd   :  { %113 = vst.msk [vmem:[#allocation2 + $0x1] sm:$0xff] %vm112_vm4, %v107_v5  ;;  %v582_v5 = vld [vmem:[#allocation8 + $0x18] sm:$0xff] }
  0xbe   :  { %127 = vst.msk [vmem:[#allocation2 + $0x1] sm:$0xff] %vm126_vm5, %v121_v4  ;;  %v581_v4 = vld [vmem:[#allocation8 + $0x10] sm:$0xff] }
  0xc0   :  { %v123_v6 = vpop.permute.xlu1 %122  ;;  %v109_v7 = vpop.permute.xlu0 %108 }
  0xc1   :  { %114 = vst.msk [vmem:[#allocation2 + $0x9] sm:$0xff] %vm112_vm4, %v109_v7  ;;  %v596_v7 = vld [vmem:[#allocation8 + $0x80] sm:$0xff] }
  0xc2   :  { %128 = vst.msk [vmem:[#allocation2 + $0x9] sm:$0xff] %vm126_vm5, %v123_v6  ;;  %v1715_v6 = vpack.c.bf16 %v582_v5, %v581_v4 }
  0xc4   :  { %v137_v8 = vpop.permute.xlu1 %136  ;;  %v135_v9 = vpop.permute.xlu0 %134 }
  0xc5   :  { %142 = vst.msk [vmem:[#allocation2 + $0x9] sm:$0xff] %vm140_vm6, %v137_v8  ;;  %141 = vst.msk [vmem:[#allocation2 + $0x1] sm:$0xff] %vm140_vm6, %v135_v9  ;;  %v597_v8 = vld [vmem:[#allocation8 + $0x88] sm:$0xff] }
  0xc6   :  { %v1688_v9 = vpack.c.bf16 %v597_v8, %v596_v7 }
  0xc8   :  { %v154_v10 = vpop.permute.xlu0 %153  ;;  %v167_v11 = vpop.permute.xlu1 %166 }
  0xc9   :  { %159 = vst.msk [vmem:[#allocation2 + $0x13] sm:$0xff] %vm112_vm4, %v154_v10  ;;  %v583_v10 = vld [vmem:[#allocation8 + $0x20] sm:$0xff] }
  0xca   :  { %172 = vst.msk [vmem:[#allocation2 + $0x13] sm:$0xff] %vm126_vm5, %v167_v11  ;;  %v584_v11 = vld [vmem:[#allocation8 + $0x28] sm:$0xff] }
  0xcb   :  { %v1718_v12 = vpack.c.bf16 %v584_v11, %v583_v10 }
  0xcc   :  { %v180_v14 = vpop.permute.xlu0 %179  ;;  %v156_v15 = vpop.permute.xlu1 %155  ;;  %v2080_v16 = vld [vmem:[#allocation2] sm:$0xff]  ;;  %v2082_v17 = vld [vmem:[#allocation2 + $0x8] sm:$0xff] }
  0xcd   :  { %185 = vst.msk [vmem:[#allocation2 + $0x13] sm:$0xff] %vm140_vm6, %v180_v14  ;;  %v231_v18 = vrot.slane %v2080_v16, 1  ;;  %1365 = vmatmul.mubr.f32.vlgmr.msra.gmra.mrb[0].mxu1 %v2080_v16  ;;  %v232_v19 = vrot.slane %v2082_v17, 1  ;;  %v443_v54 = vrot.slane %v2080_v16, 2  ;;  %v444_v55 = vrot.slane %v2082_v17, 2  ;;  %v599_v14 = vld [vmem:[#allocation8 + $0x98] sm:$0xff] }
  0xce   :  { %160 = vst.msk [vmem:[#allocation2 + $0x1b] sm:$0xff] %vm112_vm4, %v156_v15  ;;  %1367 = vmatprep.mubr.msk.f32.mxu1 %vm1905_vm1, %v1902_v1  ;;  %1689 = vmatpush3.bf16.msra.mxu1 %v1688_v9  ;;  %v585_v15 = vld [vmem:[#allocation8 + $0x30] sm:$0xff]  ;;  %v1691_v16 = vpack.c.bf16 %v599_v14, %v598_v13 }
  0xcf   :  { %v233_v23 = vsel %vm230_vm7, %v231_v18, %v232_v19  ;;  %v445_v57 = vsel %vm442_vm8, %v443_v54, %v444_v55  ;;  %1690 = vmatprep.subr.bf16.mxu1 %v1901_v0  ;;  %v600_v18 = vld [vmem:[#allocation8 + $0xa0] sm:$0xff]  ;;  %v1131_v13 = vld [vmem:[%s2253_s2] ss:$0 sm:$0xff] }
  0xd0   :  { %v169_v24 = vpop.permute.xlu0 %168  ;;  %1318 = vmatmul.mubr.f32.vlgmr.msra.gmra.mrb[0].mxu0 %v233_v23  ;;  %v182_v25 = vpop.permute.xlu1 %181  ;;  %v588_v23 = vld [vmem:[#allocation8 + $0x48] sm:$0xff] }
  0xd1   :  { %173 = vst.msk [vmem:[#allocation2 + $0x1b] sm:$0xff] %vm126_vm5, %v169_v24  ;;  %1665 = vmatpush3.bf16.msra.mxu0 %v1664_v20  ;;  %1368 = vmatmul.mubr.f32.gmra.mrb[2].mxu1 %v2082_v17  ;;  %v586_v17 = vld [vmem:[#allocation8 + $0x38] sm:$0xff]  ;;  %v1724_v24 = vpack.c.bf16 %v588_v23, %v587_v22 }
  0xd2   :  { %186 = vst.msk [vmem:[#allocation2 + $0x1b] sm:$0xff] %vm140_vm6, %v182_v25  ;;  %1666 = vmatprep.subr.bf16.mxu0 %v1901_v0  ;;  %1370 = vmatprep.mubr.msk.f32.mxu1 %vm1905_vm1, %v1902_v1  ;;  %v1721_v20 = vpack.c.bf16 %v586_v17, %v585_v15  ;;  %v602_v25 = vld [vmem:[#allocation8 + $0xb0] sm:$0xff] }
  0xd3   :  { %1320 = vmatprep.mubr.msk.f32.mxu0 %vm1905_vm1, %v1902_v1  ;;  %1692 = vmatpush3.bf16.msra.mxu1 %v1691_v16 }
  0xd4   :  { %v2100_v29 = vld [vmem:[#allocation2 + $0x10] sm:$0xff]  ;;  %1693 = vmatprep.subr.bf16.mxu1 %v1901_v0 }
  0xd5   :  { %1668 = vmatpush3.bf16.msra.mxu0 %v1667_v26  ;;  %v234_v30 = vrot.slane %v2100_v29, 1  ;;  %1371 = vmatmul.mubr.f32.gmra.mrb[4].mxu1 %v2100_v29  ;;  %v446_v56 = vrot.slane %v2100_v29, 2  ;;  %v603_v26 = vld [vmem:[#allocation8 + $0xb8] sm:$0xff] }
  0xd6   :  { %1669 = vmatprep.subr.bf16.mxu0 %v1901_v0  ;;  %1373 = vmatprep.mubr.msk.f32.mxu1 %vm1905_vm1, %v1902_v1  ;;  %v1697_v27 = vpack.c.bf16 %v603_v26, %v602_v25  ;;  %v590_v29 = vld [vmem:[#allocation8 + $0x58] sm:$0xff] }
  0xd7   :  { %v235_v34 = vsel %vm230_vm7, %v232_v19, %v234_v30  ;;  %v447_v59 = vsel %vm442_vm8, %v444_v55, %v446_v56  ;;  %v601_v19 = vld [vmem:[#allocation8 + $0xa8] sm:$0xff] }
  0xd8   :  { %1321 = vmatmul.mubr.f32.gmra.mrb[2].mxu0 %v235_v34  ;;  %v1694_v21 = vpack.c.bf16 %v601_v19, %v600_v18  ;;  %v591_v34 = vld [vmem:[#allocation8 + $0x60] sm:$0xff] }
  0xd9   :  { %1671 = vmatpush3.bf16.msra.mxu0 %v1670_v31  ;;  %v190_v35 = vld [vmem:[#allocation2 + $0x18] sm:$0xff]  ;;  %1323 = vmatprep.mubr.msk.f32.mxu0 %vm1905_vm1, %v1902_v1  ;;  %v191_v38 = vld [vmem:[#allocation2 + $0x20] sm:$0xf]  ;;  %v604_v31 = vld [vmem:[#allocation8 + $0xc0] sm:$0xff] }
  0xda   :  { %v236_v37 = vrot.slane %v190_v35, 1  ;;  %1374 = vmatmul.mubr.f32.gmra.mrb[6].mxu1 %v190_v35  ;;  %1672 = vmatprep.subr.bf16.mxu0 %v1901_v0  ;;  %v238_v42 = vrot.slane %v191_v38, 1  ;;  %v448_v58 = vrot.slane %v190_v35, 2  ;;  %v450_v60 = vrot.slane %v191_v38, 2  ;;  %v592_v35 = vld [vmem:[#allocation8 + $0x68] sm:$0xff] }
  0xdb   :  { %1376 = vmatprep.mubr.msk.f32.mxu1 %vm1905_vm1, %v1902_v1  ;;  %1695 = vmatpush3.bf16.msra.mxu1 %v1694_v21  ;;  %v1700_v33 = vpack.c.bf16 %v605_v32, %v604_v31 }
  0xdc   :  { %v237_v41 = vsel %vm230_vm7, %v234_v30, %v236_v37  ;;  %v239_v46 = vsel %vm230_vm7, %v236_v37, %v238_v42  ;;  %v449_v61 = vsel %vm442_vm8, %v446_v56, %v448_v58  ;;  %v451_v62 = vsel %vm442_vm8, %v448_v58, %v450_v60  ;;  %1696 = vmatprep.subr.bf16.mxu1 %v1901_v0  ;;  %v606_v37 = vld [vmem:[#allocation8 + $0xd0] sm:$0xff] }
  0xdd   :  { %1674 = vmatpush3.bf16.msra.mxu0 %v1673_v36  ;;  %v1727_v30 = vpack.c.bf16 %v590_v29, %v589_v28  ;;  %v1730_v36 = vpack.c.bf16 %v592_v35, %v591_v34  ;;  %v812_v34 = vld [vmem:[#allocation8 + $0x100] sm:$0xff]  ;;  %v813_v35 = vld [vmem:[#allocation8 + $0x108] sm:$0xff] }
  0xde   :  { %1324 = vmatmul.mubr.f32.gmra.mrb[4].mxu0 %v237_v41  ;;  %1377 = vmatmul.mubr.f32.gmra.mrb[8].mxu1 %v191_v38  ;;  %v607_v38 = vld [vmem:[#allocation8 + $0xd8] sm:$0xff] }
  0xdf   :  { %1675 = vmatprep.subr.bf16.mxu0 %v1901_v0  ;;  %1326 = vmatprep.mubr.msk.f32.mxu0 %vm1905_vm1, %v1902_v1  ;;  %v1703_v39 = vpack.c.bf16 %v607_v38, %v606_v37  ;;  %v594_v41 = vld [vmem:[#allocation8 + $0x78] sm:$0xff] }
  0xe0   :  { %1458 = vmatprep.mubr.msk.f32.mxu1 %vm1905_vm1, %v1902_v1  ;;  %1698 = vmatpush3.bf16.msra.mxu1 %v1697_v27 }
  0xe1   :  { %1677 = vmatpush3.bf16.msra.mxu0 %v1676_v43  ;;  %1699 = vmatprep.subr.bf16.mxu1 %v1901_v0  ;;  %v608_v43 = vld [vmem:[#allocation8 + $0xe0] sm:$0xff] }
  0xe2   :  { %1327 = vmatmul.mubr.f32.gmra.mrb[6].mxu0 %v239_v46  ;;  %1678 = vmatprep.subr.bf16.mxu0 %v1901_v0  ;;  %v1706_v45 = vpack.c.bf16 %v609_v44, %v608_v43  ;;  %v610_v46 = vld [vmem:[#allocation8 + $0xf0] sm:$0xff]  ;;  %v1736_v43 = vpack.c.bf16 %v813_v35, %v812_v34  ;;  %v1041_v35 = vld [vmem:[#allocation9 + $0x40] sm:$0xff] }
  0xe3   :  { %1329 = vmatprep.mubr.msk.f32.mxu0 %vm1905_vm1, %v1902_v1  ;;  %v814_v44 = vld [vmem:[#allocation8 + $0x110] sm:$0xff] }
  0xe4   :  { %1701 = vmatpush3.bf16.msra.mxu1 %v1700_v33 }
  0xe5   :  { %1680 = vmatpush3.bf16.msra.mxu0 %v1679_v47  ;;  %1702 = vmatprep.subr.bf16.mxu1 %v1901_v0  ;;  %v611_v47 = vld [vmem:[#allocation8 + $0xf8] sm:$0xff] }
  0xe6   :  { %1330 = vmatmul.mubr.f32.gmra.mrb[8].mxu0 %v238_v42  ;;  %1681 = vmatprep.subr.bf16.mxu0 %v1901_v0  ;;  %v1733_v42 = vpack.c.bf16 %v594_v41, %v593_v40  ;;  %v1709_v48 = vpack.c.bf16 %v611_v47, %v610_v46 }
  0xe7   :  { %1411 = vmatprep.mubr.msk.f32.mxu0 %vm1905_vm1, %v1902_v1 }
  0xe8   :  { %1704 = vmatpush3.bf16.msra.mxu1 %v1703_v39 }
  0xe9   :  { %1683 = vmatpush3.bf16.msra.mxu0 %v1682_v50  ;;  %1705 = vmatprep.subr.bf16.mxu1 %v1901_v0 }
  0xea   :  { %1684 = vmatprep.subr.bf16.mxu0 %v1901_v0 }
  0xec   :  { %1707 = vmatpush3.bf16.msra.mxu1 %v1706_v45  ;;  %v815_v45 = vld [vmem:[#allocation8 + $0x118] sm:$0xff] }
  0xed   :  { %1686 = vmatpush3.bf16.msra.mxu0 %v1685_v53  ;;  %1708 = vmatprep.subr.bf16.mxu1 %v1901_v0 }
  0xee   :  { %1711 = vmatprep.subr.bf16.mxu0 %v1901_v0 }
  0xf0   :  { %1412 = vmatmul.mubr.f32.vlgmr.msra.gmra.mrb[10].mxu0 %v445_v57  ;;  %1710 = vmatpush3.bf16.msra.mxu1 %v1709_v48 }
  0xf1   :  { %1414 = vmatprep.mubr.msk.f32.mxu0 %vm1905_vm1, %v1902_v1  ;;  %1713 = vmatpush3.bf16.msra.mxu0 %v1712_v3 }
  0xf2   :  { %1714 = vmatprep.subr.bf16.mxu0 %v1901_v0  ;;  %1735 = vmatprep.subr.bf16.mxu1 %v1901_v0 }
  0xf4   :  { %1415 = vmatmul.mubr.f32.gmra.mrb[12].mxu0 %v447_v59 }
  0xf5   :  { %1417 = vmatprep.mubr.msk.f32.mxu0 %vm1905_vm1, %v1902_v1  ;;  %1716 = vmatpush3.bf16.msra.mxu0 %v1715_v6 }
  0xf6   :  { %1717 = vmatprep.subr.bf16.mxu0 %v1901_v0 }
  0xf8   :  { %1418 = vmatmul.mubr.f32.gmra.mrb[14].mxu0 %v449_v61 }
  0xf9   :  { %1420 = vmatprep.mubr.msk.f32.mxu0 %vm1905_vm1, %v1902_v1  ;;  %1719 = vmatpush3.bf16.msra.mxu0 %v1718_v12 }
  0xfa   :  { %1720 = vmatprep.subr.bf16.mxu0 %v1901_v0 }
  0xfc   :  { %1421 = vmatmul.mubr.f32.gmra.mrb[16].mxu0 %v451_v62 }
  0xfd   :  { %1423 = vmatprep.mubr.msk.f32.mxu0 %vm1905_vm1, %v1902_v1  ;;  %1722 = vmatpush3.bf16.msra.mxu0 %v1721_v20 }
  0xfe   :  { %1723 = vmatprep.subr.bf16.mxu0 %v1901_v0 }
 0x100   :  { %1424 = vmatmul.mubr.f32.gmra.mrb[18].mxu0 %v450_v60 }
 0x101   :  { %1505 = vmatprep.mubr.msk.f32.mxu0 %vm1905_vm1, %v1902_v1  ;;  %1725 = vmatpush3.bf16.msra.mxu0 %v1724_v24 }
 0x102   :  { %1726 = vmatprep.subr.bf16.mxu0 %v1901_v0 }
 0x105   :  { %1728 = vmatpush3.bf16.msra.mxu0 %v1727_v30 }
 0x106   :  { %1729 = vmatprep.subr.bf16.mxu0 %v1901_v0 }
 0x109   :  { %1731 = vmatpush3.bf16.msra.mxu0 %v1730_v36 }
 0x10a   :  { %1732 = vmatprep.subr.bf16.mxu0 %v1901_v0 }
 0x10d   :  { %1734 = vmatpush3.bf16.msra.mxu0 %v1733_v42 }
 0x10e   :  { %1759 = vmatprep.subr.bf16.mxu0 %v1901_v0 }
 0x1a0   :  { %v401_v49 = vpop.f32.mrb[0].mxu1 }
 0x1a1   :  { %v1366_v50 = vpop.f32.mrb[1].mxu1 }
 0x1a2   :  { %v1739_v50 = vpack.c.bf16 %v815_v45, %v814_v44  ;;  %v1047_v44 = vld [vmem:[#allocation9 + $0x70] sm:$0xff]  ;;  %v1048_v45 = vld [vmem:[#allocation9 + $0x78] sm:$0xff] }
 0x1a3   :  { %v311_v51 = vpop.f32.mrb[0].mxu0 }
 0x1a4   :  { %v402_v52 = vadd.f32 %v401_v49, %v311_v51  ;;  %v1319_v53 = vpop.f32.mrb[1].mxu0  ;;  %v406_v54 = vpop.f32.mrb[2].mxu1  ;;  %v816_v51 = vld [vmem:[#allocation8 + $0x120] sm:$0xff] }
 0x1a5   :  { %v1369_v55 = vpop.f32.mrb[3].mxu1 }
 0x1a8   :  { %v411_v56 = vpop.f32.mrb[4].mxu1 }
 0x1a9   :  { %v1372_v57 = vpop.f32.mrb[5].mxu1 }
 0x1aa   :  { %v818_v57 = vld [vmem:[#allocation8 + $0x130] sm:$0xff] }
 0x1ab   :  { %v316_v58 = vpop.f32.mrb[2].mxu0 }
 0x1ac   :  { %v407_v59 = vadd.f32 %v406_v54, %v316_v58  ;;  %v1322_v60 = vpop.f32.mrb[3].mxu0  ;;  %v819_v58 = vld [vmem:[#allocation8 + $0x138] sm:$0xff] }
 0x1ad   :  { %v416_v61 = vpop.f32.mrb[6].mxu1 }
 0x1ae   :  { %v1375_v62 = vpop.f32.mrb[7].mxu1 }
 0x1af   :  { %v1745_v62 = vpack.c.bf16 %v819_v58, %v818_v57 }
 0x1b1   :  { %v321_v63 = vpop.f32.mrb[4].mxu0  ;;  %v421_v2 = vpop.f32.mrb[8].mxu1 }
 0x1b2   :  { %v412_v3 = vadd.f32 %v411_v56, %v321_v63  ;;  %v1325_v4 = vpop.f32.mrb[5].mxu0  ;;  %v1378_v5 = vpop.f32.mrb[9].mxu1  ;;  %v820_v63 = vld [vmem:[#allocation8 + $0x140] sm:$0xff] }
 0x1b3   :  { %v822_v5 = vld [vmem:[#allocation8 + $0x150] sm:$0xff] }
 0x1b5   :  { %v326_v6 = vpop.f32.mrb[6].mxu0 }
 0x1b6   :  { %v417_v7 = vadd.f32 %v416_v61, %v326_v6  ;;  %v1328_v8 = vpop.f32.mrb[7].mxu0  ;;  %v823_v6 = vld [vmem:[#allocation8 + $0x158] sm:$0xff] }
 0x1b7   :  { %v824_v8 = vld [vmem:[#allocation8 + $0x160] sm:$0xff] }
 0x1b9   :  { %v331_v9 = vpop.f32.mrb[8].mxu0 }
 0x1ba   :  { %v422_v10 = vadd.f32 %v421_v2, %v331_v9  ;;  %v1331_v11 = vpop.f32.mrb[9].mxu0  ;;  %v821_v2 = vld [vmem:[#allocation8 + $0x148] sm:$0xff] }
 0x1bb   :  { %v1748_v4 = vpack.c.bf16 %v821_v2, %v820_v63  ;;  %v825_v9 = vld [vmem:[#allocation8 + $0x168] sm:$0xff]  ;;  %v826_v11 = vld [vmem:[#allocation8 + $0x170] sm:$0xff] }
 0x1c3   :  { %v523_v12 = vpop.f32.mrb[10].mxu0 }
 0x1c4   :  { %v547_v14 = vadd.f32 %v523_v12, %v402_v52  ;;  %v1413_v15 = vpop.f32.mrb[11].mxu0  ;;  %v817_v52 = vld [vmem:[#allocation8 + $0x128] sm:$0xff]  ;;  %v827_v12 = vld [vmem:[#allocation8 + $0x178] sm:$0xff] }
 0x1c5   :  { %v1742_v56 = vpack.c.bf16 %v817_v52, %v816_v51 }
 0x1c6   :  { %v559_v16 = vadd.f32 %v1131_v13, %v547_v14 }
 0x1c7   :  { %v528_v17 = vpop.f32.mrb[12].mxu0 }
 0x1c8   :  { %v564_v18 = vmax.f32 %v559_v16, 0.0  ;;  %v548_v19 = vadd.f32 %v528_v17, %v407_v59  ;;  %v1416_v20 = vpop.f32.mrb[13].mxu0 }
 0x1ca   :  { %569 = vst [vmem:[#allocation3 + $0x1] sm:$0xff] %v564_v18  ;;  %v560_v21 = vadd.f32 %v1131_v13, %v548_v19 }
 0x1cb   :  { %v533_v22 = vpop.f32.mrb[14].mxu0 }
 0x1cc   :  { %v565_v23 = vmax.f32 %v560_v21, 0.0  ;;  %v549_v24 = vadd.f32 %v533_v22, %v412_v3  ;;  %v1419_v25 = vpop.f32.mrb[15].mxu0 }
 0x1cd   :  { %v1035_v25 = vld [vmem:[#allocation9 + $0x10] sm:$0xff] }
 0x1ce   :  { %570 = vst [vmem:[#allocation3 + $0x9] sm:$0xff] %v565_v23  ;;  %v561_v26 = vadd.f32 %v1131_v13, %v549_v24  ;;  %v1033_v23 = vld [vmem:[#allocation9] sm:$0xff]  ;;  %v1034_v24 = vld [vmem:[#allocation9 + $0x8] sm:$0xff] }
 0x1cf   :  { %v538_v27 = vpop.f32.mrb[16].mxu0 }
 0x1d0   :  { %v566_v28 = vmax.f32 %v561_v26, 0.0  ;;  %v550_v29 = vadd.f32 %v538_v27, %v417_v7  ;;  %v1422_v30 = vpop.f32.mrb[17].mxu0  ;;  %v1751_v7 = vpack.c.bf16 %v823_v6, %v822_v5  ;;  %v1766_v26 = vpack.c.bf16 %v1034_v24, %v1033_v23  ;;  %v1036_v27 = vld [vmem:[#allocation9 + $0x18] sm:$0xff] }
 0x1d1   :  { %v2164_v31 = vld [vmem:[#allocation3] sm:$0xff]  ;;  %v1038_v30 = vld [vmem:[#allocation9 + $0x28] sm:$0xff] }
 0x1d2   :  { %571 = vst [vmem:[#allocation3 + $0x11] sm:$0xfc] %v566_v28  ;;  %v562_v32 = vadd.f32 %v1131_v13, %v550_v29  ;;  %1506 = vmatmul.mubr.f32.vlgmr.msra.gmra.mrb[20].mxu0 %v2164_v31  ;;  %v617_v40 = vrot.slane %v2164_v31, 1  ;;  %v828_v15 = vrot.slane %v2164_v31, 2  ;;  %v1769_v28 = vpack.c.bf16 %v1036_v27, %v1035_v25  ;;  %v1037_v29 = vld [vmem:[#allocation9 + $0x20] sm:$0xff] }
 0x1d3   :  { %v543_v33 = vpop.f32.mrb[18].mxu0  ;;  %1508 = vmatprep.mubr.msk.f32.mxu0 %vm1905_vm1, %v1902_v1  ;;  %v1772_v31 = vpack.c.bf16 %v1038_v30, %v1037_v29 }
 0x1d4   :  { %v567_v36 = vmax.f32 %v562_v32, 0.0  ;;  %v551_v37 = vadd.f32 %v543_v33, %v422_v10  ;;  %v1425_v38 = vpop.f32.mrb[19].mxu0  ;;  %v1754_v10 = vpack.c.bf16 %v825_v9, %v824_v8  ;;  %v1039_v32 = vld [vmem:[#allocation9 + $0x30] sm:$0xff]  ;;  %v1040_v33 = vld [vmem:[#allocation9 + $0x38] sm:$0xff] }
 0x1d5   :  { %v2169_v39 = vld [vmem:[#allocation3 + $0x8] sm:$0xff]  ;;  %v1775_v34 = vpack.c.bf16 %v1040_v33, %v1039_v32  ;;  %v1043_v38 = vld [vmem:[#allocation9 + $0x50] sm:$0xff] }
 0x1d6   :  { %572 = vst [vmem:[#allocation3 + $0x19] sm:$0xff] %v567_v36  ;;  %v563_v41 = vadd.f32 %v1131_v13, %v551_v37  ;;  %v618_v42 = vrot.slane %v2169_v39, 1  ;;  %1509 = vmatmul.mubr.f32.gmra.mrb[22].mxu0 %v2169_v39  ;;  %v1757_v13 = vpack.c.bf16 %v827_v12, %v826_v11  ;;  %v829_v14 = vrot.slane %v2169_v39, 2  ;;  %v1042_v36 = vld [vmem:[#allocation9 + $0x48] sm:$0xff]  ;;  %v1044_v39 = vld [vmem:[#allocation9 + $0x58] sm:$0xff] }
 0x1d7   :  { %1511 = vmatprep.mubr.msk.f32.mxu0 %vm1905_vm1, %v1902_v1  ;;  %v1778_v37 = vpack.c.bf16 %v1042_v36, %v1041_v35 }
 0x1d8   :  { %v568_v46 = vmax.f32 %v563_v41, 0.0  ;;  %v619_v47 = vsel %vm230_vm7, %v617_v40, %v618_v42  ;;  %v830_v17 = vsel %vm442_vm8, %v828_v15, %v829_v14  ;;  %v1781_v40 = vpack.c.bf16 %v1044_v39, %v1043_v38  ;;  %v1045_v41 = vld [vmem:[#allocation9 + $0x60] sm:$0xff]  ;;  %v954_v38 = vld [vmem:[%s2256_s5] sm:$0xf] }
 0x1d9   :  { %1459 = vmatmul.mubr.f32.vlgmr.msra.gmra.mrb[10].mxu1 %v619_v47  ;;  %v2177_v48 = vld [vmem:[#allocation3 + $0x10] sm:$0xff] }
 0x1da   :  { %573 = vst [vmem:[#allocation3 + $0x21] sm:$0x3] %v568_v46  ;;  %1737 = vmatpush3.bf16.msra.mxu1 %v1736_v43  ;;  %v620_v49 = vrot.slane %v2177_v48, 1  ;;  %1512 = vmatmul.mubr.f32.gmra.mrb[24].mxu0 %v2177_v48  ;;  %v831_v16 = vrot.slane %v2177_v48, 2  ;;  %v1787_v46 = vpack.c.bf16 %v1048_v45, %v1047_v44 }
 0x1db   :  { %1461 = vmatprep.mubr.msk.f32.mxu1 %vm1905_vm1, %v1902_v1  ;;  %1738 = vmatprep.subr.bf16.mxu1 %v1901_v0 }
 0x1dc   :  { %v621_v53 = vsel %vm230_vm7, %v618_v42, %v620_v49  ;;  %1514 = vmatprep.mubr.msk.f32.mxu0 %vm1905_vm1, %v1902_v1  ;;  %v832_v19 = vsel %vm442_vm8, %v829_v14, %v831_v16  ;;  %v1046_v42 = vld [vmem:[#allocation9 + $0x68] sm:$0xff] }
 0x1dd   :  { %1462 = vmatmul.mubr.f32.gmra.mrb[12].mxu1 %v621_v53  ;;  %v2187_v54 = vld [vmem:[#allocation3 + $0x18] sm:$0xff]  ;;  %v1784_v43 = vpack.c.bf16 %v1046_v42, %v1045_v41 }
 0x1de   :  { %1740 = vmatpush3.bf16.msra.mxu1 %v1739_v50  ;;  %v622_v55 = vrot.slane %v2187_v54, 1  ;;  %1515 = vmatmul.mubr.f32.gmra.mrb[26].mxu0 %v2187_v54  ;;  %v833_v18 = vrot.slane %v2187_v54, 2 }
 0x1df   :  { %1464 = vmatprep.mubr.msk.f32.mxu1 %vm1905_vm1, %v1902_v1  ;;  %1741 = vmatprep.subr.bf16.mxu1 %v1901_v0 }
 0x1e0   :  { %v623_v59 = vsel %vm230_vm7, %v620_v49, %v622_v55  ;;  %1517 = vmatprep.mubr.msk.f32.mxu0 %vm1905_vm1, %v1902_v1  ;;  %v834_v21 = vsel %vm442_vm8, %v831_v16, %v833_v18 }
 0x1e1   :  { %1465 = vmatmul.mubr.f32.gmra.mrb[14].mxu1 %v623_v59  ;;  %v578_v60 = vld [vmem:[#allocation3 + $0x20] sm:$0xf] }
 0x1e2   :  { %1743 = vmatpush3.bf16.msra.mxu1 %v1742_v56  ;;  %v624_v61 = vrot.slane %v578_v60, 1  ;;  %1518 = vmatmul.mubr.f32.gmra.mrb[28].mxu0 %v578_v60  ;;  %v835_v20 = vrot.slane %v578_v60, 2 }
 0x1e3   :  { %1467 = vmatprep.mubr.msk.f32.mxu1 %vm1905_vm1, %v1902_v1  ;;  %1744 = vmatprep.subr.bf16.mxu1 %v1901_v0 }
 0x1e4   :  { %v625_v3 = vsel %vm230_vm7, %v622_v55, %v624_v61  ;;  %1577 = vmatprep.mubr.msk.f32.mxu0 %vm1905_vm1, %v1902_v1  ;;  %v836_v22 = vsel %vm442_vm8, %v833_v18, %v835_v20 }
 0x1e5   :  { %1468 = vmatmul.mubr.f32.gmra.mrb[16].mxu1 %v625_v3 }
 0x1e6   :  { %1746 = vmatpush3.bf16.msra.mxu1 %v1745_v62  ;;  %1470 = vmatprep.mubr.msk.f32.mxu1 %vm1905_vm1, %v1902_v1 }
 0x1e7   :  { %1747 = vmatprep.subr.bf16.mxu1 %v1901_v0 }
 0x1e9   :  { %1471 = vmatmul.mubr.f32.gmra.mrb[18].mxu1 %v624_v61 }
 0x1ea   :  { %1749 = vmatpush3.bf16.msra.mxu1 %v1748_v4  ;;  %1552 = vmatprep.mubr.msk.f32.mxu1 %vm1905_vm1, %v1902_v1 }
 0x1eb   :  { %1750 = vmatprep.subr.bf16.mxu1 %v1901_v0 }
 0x1ee   :  { %1752 = vmatpush3.bf16.msra.mxu1 %v1751_v7 }
 0x1ef   :  { %1753 = vmatprep.subr.bf16.mxu1 %v1901_v0 }
 0x1f2   :  { %1755 = vmatpush3.bf16.msra.mxu1 %v1754_v10 }
 0x1f3   :  { %1756 = vmatprep.subr.bf16.mxu1 %v1901_v0 }
 0x1f6   :  { %1758 = vmatpush3.bf16.msra.mxu1 %v1757_v13  ;;  %v1132_v13 = vld [vmem:[%s2255_s4] ss:$0 sm:$0xff] }
 0x1f7   :  { %1765 = vmatprep.subr.bf16.mxu1 %v1901_v0 }
 0x1f9   :  { %1553 = vmatmul.mubr.f32.vlgmr.msra.gmra.mrb[20].mxu1 %v830_v17 }
 0x1fa   :  { %1555 = vmatprep.mubr.msk.f32.mxu1 %vm1905_vm1, %v1902_v1  ;;  %1767 = vmatpush3.bf16.msra.mxu1 %v1766_v26 }
 0x1fb   :  { %1768 = vmatprep.subr.bf16.mxu1 %v1901_v0 }
 0x1fd   :  { %1556 = vmatmul.mubr.f32.gmra.mrb[22].mxu1 %v832_v19 }
 0x1fe   :  { %1558 = vmatprep.mubr.msk.f32.mxu1 %vm1905_vm1, %v1902_v1  ;;  %1770 = vmatpush3.bf16.msra.mxu1 %v1769_v28 }
 0x1ff   :  { %1771 = vmatprep.subr.bf16.mxu1 %v1901_v0 }
 0x201   :  { %1559 = vmatmul.mubr.f32.gmra.mrb[24].mxu1 %v834_v21 }
 0x202   :  { %1561 = vmatprep.mubr.msk.f32.mxu1 %vm1905_vm1, %v1902_v1  ;;  %1773 = vmatpush3.bf16.msra.mxu1 %v1772_v31 }
 0x203   :  { %1774 = vmatprep.subr.bf16.mxu1 %v1901_v0 }
 0x205   :  { %1562 = vmatmul.mubr.f32.gmra.mrb[26].mxu1 %v836_v22 }
 0x206   :  { %1564 = vmatprep.mubr.msk.f32.mxu1 %vm1905_vm1, %v1902_v1  ;;  %1776 = vmatpush3.bf16.msra.mxu1 %v1775_v34 }
 0x207   :  { %1777 = vmatprep.subr.bf16.mxu1 %v1901_v0 }
 0x209   :  { %1565 = vmatmul.mubr.f32.gmra.mrb[28].mxu1 %v835_v20 }
 0x20a   :  { %1612 = vmatprep.mubr.msk.f32.mxu1 %vm1905_vm1, %v1902_v1  ;;  %1779 = vmatpush3.bf16.msra.mxu1 %v1778_v37 }
 0x20b   :  { %1780 = vmatprep.subr.bf16.mxu1 %v1901_v0 }
 0x20e   :  { %1782 = vmatpush3.bf16.msra.mxu1 %v1781_v40 }
 0x20f   :  { %1783 = vmatprep.subr.bf16.mxu1 %v1901_v0 }
 0x212   :  { %1785 = vmatpush3.bf16.msra.mxu1 %v1784_v43 }
 0x213   :  { %1786 = vmatprep.subr.bf16.mxu1 %v1901_v0 }
 0x216   :  { %1788 = vmatpush3.bf16.msra.mxu1 %v1787_v46 }
 0x2a5   :  { %v787_v47 = vpop.f32.mrb[20].mxu0 }
 0x2a6   :  { %v1507_v48 = vpop.f32.mrb[21].mxu0 }
 0x2a9   :  { %v792_v49 = vpop.f32.mrb[22].mxu0 }
 0x2aa   :  { %v1510_v50 = vpop.f32.mrb[23].mxu0 }
 0x2ac   :  { %v697_v51 = vpop.f32.mrb[10].mxu1 }
 0x2ad   :  { %v788_v52 = vadd.f32 %v787_v47, %v697_v51  ;;  %v1460_v53 = vpop.f32.mrb[11].mxu1  ;;  %v797_v54 = vpop.f32.mrb[24].mxu0 }
 0x2ae   :  { %v1513_v55 = vpop.f32.mrb[25].mxu0 }
 0x2b0   :  { %v702_v56 = vpop.f32.mrb[12].mxu1 }
 0x2b1   :  { %v793_v57 = vadd.f32 %v792_v49, %v702_v56  ;;  %v1463_v58 = vpop.f32.mrb[13].mxu1  ;;  %v802_v59 = vpop.f32.mrb[26].mxu0 }
 0x2b2   :  { %v1516_v60 = vpop.f32.mrb[27].mxu0 }
 0x2b4   :  { %v707_v61 = vpop.f32.mrb[14].mxu1 }
 0x2b5   :  { %v798_v62 = vadd.f32 %v797_v54, %v707_v61  ;;  %v1466_v63 = vpop.f32.mrb[15].mxu1  ;;  %v807_v2 = vpop.f32.mrb[28].mxu0 }
 0x2b6   :  { %v1519_v3 = vpop.f32.mrb[29].mxu0 }
 0x2b8   :  { %v712_v4 = vpop.f32.mrb[16].mxu1 }
 0x2b9   :  { %v803_v5 = vadd.f32 %v802_v59, %v712_v4  ;;  %v1469_v6 = vpop.f32.mrb[17].mxu1 }
 0x2bc   :  { %v717_v7 = vpop.f32.mrb[18].mxu1 }
 0x2bd   :  { %v808_v8 = vadd.f32 %v807_v2, %v717_v7  ;;  %v1472_v9 = vpop.f32.mrb[19].mxu1 }
 0x2cc   :  { %v908_v10 = vpop.f32.mrb[20].mxu1 }
 0x2cd   :  { %v932_v11 = vadd.f32 %v908_v10, %v788_v52  ;;  %v1554_v12 = vpop.f32.mrb[21].mxu1 }
 0x2cf   :  { %v944_v15 = vadd.f32 %v1132_v13, %v932_v11 }
 0x2d0   :  { %v913_v14 = vpop.f32.mrb[22].mxu1 }
 0x2d1   :  { %v933_v16 = vadd.f32 %v913_v14, %v793_v57  ;;  %v1557_v17 = vpop.f32.mrb[23].mxu1  ;;  %v949_v20 = vmax.f32 %v944_v15, 0.0 }
 0x2d3   :  { %v945_v18 = vadd.f32 %v1132_v13, %v933_v16 }
 0x2d4   :  { %v918_v19 = vpop.f32.mrb[24].mxu1 }
 0x2d5   :  { %v950_v21 = vmax.f32 %v945_v18, 0.0  ;;  %v934_v22 = vadd.f32 %v918_v19, %v798_v62  ;;  %v1560_v23 = vpop.f32.mrb[25].mxu1 }
 0x2d7   :  { %v1760_v24 = vpack.c.bf16 %v950_v21, %v949_v20  ;;  %v946_v26 = vadd.f32 %v1132_v13, %v934_v22 }
 0x2d8   :  { %v923_v25 = vpop.f32.mrb[26].mxu1 }
 0x2d9   :  { %v935_v27 = vadd.f32 %v923_v25, %v803_v5  ;;  %v1563_v28 = vpop.f32.mrb[27].mxu1  ;;  %1761 = vmatpush3.bf16.msra.mxu0 %v1760_v24  ;;  %v951_v31 = vmax.f32 %v946_v26, 0.0 }
 0x2da   :  { %1762 = vmatprep.subr.bf16.mxu0 %v1901_v0 }
 0x2db   :  { %v947_v29 = vadd.f32 %v1132_v13, %v935_v27 }
 0x2dc   :  { %v928_v30 = vpop.f32.mrb[28].mxu1 }
 0x2dd   :  { %v952_v32 = vmax.f32 %v947_v29, 0.0  ;;  %v936_v33 = vadd.f32 %v928_v30, %v808_v8  ;;  %v1566_v34 = vpop.f32.mrb[29].mxu1 }
 0x2df   :  { %v1763_v35 = vpack.c.bf16 %v952_v32, %v951_v31  ;;  %v948_v36 = vadd.f32 %v1132_v13, %v936_v33 }
 0x2e1   :  { %1764 = vmatpush3.bf16.msra.mxu0 %v1763_v35  ;;  %v953_v37 = vmax.f32 %v948_v36, 0.0 }
 0x2e2   :  { %1575 = vmatprep.subr.mxu0 %v1902_v1 }
 0x2e5   :  { %1576 = vmatpush3.msk.msra.mxu0 %vm959_vm9, %v953_v37 }
 0x2e6   :  { %1578 = vmatmul.mubr.msk.f32.vlgmr.msra.gmra.mrb[30].mxu0 %vm955_vm10, %v954_v38 }
 0x3b9   :  { %v1029_v0 = vpop.f32.mrb[30].mxu0 }
 0x3ba   :  { %v1579_v39 = vpop.f32.mrb[31].mxu0  ;;  %1613 = vmatmul.mubr.f32.vlgmr.msra.gmra.mrb[30].mxu1 %v1029_v0 }
 0x48d   :  { %v1115_v40 = vpop.f32.mrb[30].mxu1 }
 0x48e   :  { %1120 = vst.msk [vmem:[%s2258_s7] sm:$0x3] %vm1119_vm11, %v1115_v40  ;;  %v1614_v1 = vpop.f32.mrb[31].mxu1 }
 0x48f   :  { %1135 = vst.msk [vmem:[%s2258_s7] sm:$0xc] %vm1122_vm12, %v1115_v40 }
 0x490   :  { %1128 = vsyncpa [#allocation5], 1 }
 0x491   :  { %1129 = vsyncpa [#allocation7], 1 }
 0x492   :  { %1130 = vsyncpa [#allocation10], 1 }

</bundles_post_ra>
